<compile_context>
chip_gen: v6e
topology: v6e:2x2x1
jax: 0.10.0
libtpu: 0.0.40
codegen_flags: <defaults>
</compile_context>

<pallas_src>
import functools
import math

import jax
import jax.numpy as jnp
from jax import lax
from jax.experimental import pallas as pl
from jax.experimental.pallas import tpu as pltpu

LANE = 128
SUBLANE = 8


def _round_up(x, m):
    return ((x + m - 1) // m) * m


def _pick_n1_tile(n1p):
    """Sublane-aligned tile over the hidden-state rows (N1).  More than one
    tile exposes a "parallel" grid axis so v7x's 2 TCs can split the work."""
    if n1p <= 256:
        return n1p
    for t in (256, 128, 64, 32, 16, 8):
        if n1p % t == 0:
            return t
    return n1p


# ---------------------------------------------------------------------------
# Kernel 1: fused multi-layer GRU + partial mean-pool over this N1 tile.
# ---------------------------------------------------------------------------
def gru_stack_kernel(x_ref, wih_ref, whh_ref, bcomb_ref, bhn_ref,   # inputs
                     psum_ref,                                      # output
                     feat_ref, gi_ref,                              # scratch
                     *, num_layers, dp, n1_valid, n1_tile, compute_dtype):
    T = feat_ref.shape[0]          # recurrence length (= N0, batch_first=False)
    B = feat_ref.shape[1]          # rows of the hidden state handled here

    # Input tile -> f32 feature scratch (stays resident in VMEM across layers).
    feat_ref[...] = x_ref[...].astype(jnp.float32)

    for layer in range(num_layers):
        # Loop-invariant weight loads hoisted out of the time loop.
        wih = wih_ref[layer]          # (Dp, 3Dp)  compute_dtype
        whh = whh_ref[layer]          # (Dp, 3Dp)  compute_dtype
        bcomb = bcomb_ref[layer]      # (1, 3Dp)   f32 (b_ih with b_hh folded for r,z)
        bhn = bhn_ref[layer]          # (1, Dp)    f32 (b_hn, multiplied by r)

        # Hoisted input projection: ONE (T*B, Dp)x(Dp, 3Dp) MXU matmul,
        # off the serial critical path of the recurrence.
        feat2d = feat_ref[...].reshape(T * B, dp).astype(compute_dtype)
        gi = jnp.dot(feat2d, wih, preferred_element_type=jnp.float32) + bcomb
        gi_ref[...] = gi.reshape(T, B, 3 * dp)

        def step(t, h):
            gi_t = gi_ref[t]                                      # (B, 3Dp) f32
            gh = jnp.dot(h.astype(compute_dtype), whh,
                         preferred_element_type=jnp.float32)      # (B, 3Dp) f32
            # 128-lane-aligned gate slices (dp is a multiple of 128); all
            # elementwise gate math stays in f32 (v5e has no bf16 VPU/EUP).
            r = jax.nn.sigmoid(gi_t[:, 0:dp] + gh[:, 0:dp])
            z = jax.nn.sigmoid(gi_t[:, dp:2 * dp] + gh[:, dp:2 * dp])
            n = jnp.tanh(gi_t[:, 2 * dp:3 * dp] + r * (gh[:, 2 * dp:3 * dp] + bhn))
            h_new = (1.0 - z) * n + z * h
            feat_ref[t] = h_new
            return h_new

        h0 = jnp.zeros((B, dp), jnp.float32)
        lax.fori_loop(0, T, step, h0, unroll=True)

    # Partial mean-pool contribution of this N1 tile (sum over valid rows;
    # division by the true N1 happens in the head kernel).
    row = lax.broadcasted_iota(jnp.int32, (B, dp), 0)
    valid = (pl.program_id(0) * n1_tile + row) < n1_valid          # (B, Dp)
    masked = jnp.where(valid[None, :, :], feat_ref[...], 0.0)
    psum_ref[0] = jnp.sum(masked, axis=1)                          # (T, Dp)


# ---------------------------------------------------------------------------
# Kernel 2: finish mean-pool + Linear classifier + log_softmax.
# Reads only the tiny (num_tiles, N0, Dp) pooled partials, never the full feat.
# ---------------------------------------------------------------------------
def head_kernel(psum_ref, wcls_ref, bcls_ref, out_ref,
                *, n1_valid, num_labels, compute_dtype):
    pooled = jnp.sum(psum_ref[...], axis=0) * jnp.float32(1.0 / n1_valid)  # (N0, Dp)
    logits = jnp.dot(pooled.astype(compute_dtype), wcls_ref[...],
                     preferred_element_type=jnp.float32) + bcls_ref[...]   # (N0, Lp)
    # Mask the padded label lanes before the softmax normalization.
    col = lax.broadcasted_iota(jnp.int32, logits.shape, 1)
    logits = jnp.where(col < num_labels, logits, jnp.float32(-1e30))
    m = jnp.max(logits, axis=-1, keepdims=True)
    s = logits - m
    lse = jnp.log(jnp.sum(jnp.exp(s), axis=-1, keepdims=True))
    out_ref[...] = (s - lse).astype(out_ref.dtype)


# ---------------------------------------------------------------------------
# One-time parameter packing (pre-transpose, lane-pad, fold biases).
# ---------------------------------------------------------------------------
def prepare_params(params, hidden, num_labels, num_layers,
                   compute_dtype=jnp.float32):
    D = hidden
    Dp = _round_up(D, LANE)
    Lp = _round_up(num_labels, LANE)

    def pack_w(w):  # w: (3D, D), PyTorch gate order (r, z, n)
        wg = jnp.transpose(w.reshape(3, D, D), (0, 2, 1))          # (gate, in, out)
        wp = jnp.zeros((3, Dp, Dp), jnp.float32).at[:, :D, :D].set(wg)
        # -> (Dp, 3Dp) with each gate at a 128-aligned column offset.
        return jnp.transpose(wp, (1, 0, 2)).reshape(Dp, 3 * Dp)

    wih_l, whh_l, bcomb_l, bhn_l = [], [], [], []
    for layer in params["gru_layers"]:
        wih_l.append(pack_w(layer["w_ih"]))
        whh_l.append(pack_w(layer["w_hh"]))
        bi = layer["b_ih"].reshape(3, D)
        bh = layer["b_hh"].reshape(3, D)
        # Fold b_hh into b_ih for the r/z gates; the n-gate hidden bias must
        # stay separate because it is multiplied by r inside the cell.
        bc = jnp.zeros((3, Dp), jnp.float32)
        bc = bc.at[0, :D].set(bi[0] + bh[0])
        bc = bc.at[1, :D].set(bi[1] + bh[1])
        bc = bc.at[2, :D].set(bi[2])
        bcomb_l.append(bc.reshape(1, 3 * Dp))
        bhn_l.append(jnp.zeros((1, Dp), jnp.float32).at[0, :D].set(bh[2]))

    wcls = jnp.zeros((Dp, Lp), jnp.float32).at[:D, :num_labels].set(
        jnp.transpose(params["w_cls"]))
    bcls = jnp.zeros((1, Lp), jnp.float32).at[0, :num_labels].set(params["b_cls"])

    return {
        "wih": jnp.stack(wih_l).astype(compute_dtype),    # (Lyr, Dp, 3Dp)
        "whh": jnp.stack(whh_l).astype(compute_dtype),    # (Lyr, Dp, 3Dp)
        "bcomb": jnp.stack(bcomb_l),                      # (Lyr, 1, 3Dp) f32
        "bhn": jnp.stack(bhn_l),                          # (Lyr, 1, Dp)  f32
        "wcls": wcls.astype(compute_dtype),               # (Dp, Lp)
        "bcls": bcls,                                     # (1, Lp) f32
        "D": D, "Dp": Dp, "Lp": Lp,
        "num_labels": num_labels, "num_layers": num_layers,
        "compute_dtype": compute_dtype,
    }


# ---------------------------------------------------------------------------
# Full forward (post-embedding part).
# ---------------------------------------------------------------------------
def gru_model_forward(x, packed):
    N0, N1, D = x.shape
    Dp, Lp = packed["Dp"], packed["Lp"]
    num_layers = packed["num_layers"]
    L = packed["num_labels"]
    cdt = packed["compute_dtype"]

    N1p = _round_up(N1, SUBLANE)
    n1_tile = _pick_n1_tile(N1p)
    num_tiles = N1p // n1_tile

    # Pad features (zeros stay zero through the recurrence) and rows.
    xp = jnp.zeros((N0, N1p, Dp), jnp.float32).at[:, :N1, :D].set(x)

    gru_kernel = functools.partial(
        gru_stack_kernel, num_layers=num_layers, dp=Dp,
        n1_valid=N1, n1_tile=n1_tile, compute_dtype=cdt)

    psum = pl.pallas_call(
        gru_kernel,
        out_shape=jax.ShapeDtypeStruct((num_tiles, N0, Dp), jnp.float32),
        grid_spec=pltpu.PrefetchScalarGridSpec(
            num_scalar_prefetch=0,
            grid=(num_tiles,),
            in_specs=[
                pl.BlockSpec((N0, n1_tile, Dp), lambda j: (0, j, 0)),
                # Loop-invariant weights/biases: constant index maps (loaded
                # once per core).  On v7x, single-buffering these (Buffered(1))
                # would additionally halve their VMEM footprint.
                pl.BlockSpec((num_layers, Dp, 3 * Dp), lambda j: (0, 0, 0)),
                pl.BlockSpec((num_layers, Dp, 3 * Dp), lambda j: (0, 0, 0)),
                pl.BlockSpec((num_layers, 1, 3 * Dp), lambda j: (0, 0, 0)),
                pl.BlockSpec((num_layers, 1, Dp), lambda j: (0, 0, 0)),
            ],
            out_specs=pl.BlockSpec((1, N0, Dp), lambda j: (j, 0, 0)),
            scratch_shapes=[
                pltpu.VMEM((N0, n1_tile, Dp), jnp.float32),       # feat (all layers)
                pltpu.VMEM((N0, n1_tile, 3 * Dp), jnp.float32),   # hoisted GI
            ],
        ),
        compiler_params=pltpu.CompilerParams(
            dimension_semantics=("parallel",),        # rows are independent
            vmem_limit_bytes=32 * 1024 * 1024,
        ),
    )(xp, packed["wih"], packed["whh"], packed["bcomb"], packed["bhn"])

    head = functools.partial(
        head_kernel, n1_valid=N1, num_labels=L, compute_dtype=cdt)

    logits_p = pl.pallas_call(
        head,
        out_shape=jax.ShapeDtypeStruct((N0, Lp), jnp.float32),
        grid_spec=pltpu.PrefetchScalarGridSpec(
            num_scalar_prefetch=0,
            grid=(1,),
            in_specs=[
                pl.BlockSpec((num_tiles, N0, Dp), lambda i: (0, 0, 0)),
                pl.BlockSpec((Dp, Lp), lambda i: (0, 0)),
                pl.BlockSpec((1, Lp), lambda i: (0, 0)),
            ],
            out_specs=pl.BlockSpec((N0, Lp), lambda i: (0, 0)),
        ),
        compiler_params=pltpu.CompilerParams(
            dimension_semantics=("arbitrary",)),
    )(psum, packed["wcls"], packed["bcls"])

    return logits_p[:, :L]


# ---------------------------------------------------------------------------
# Pure-JAX reference (for sanity checking the kernels).
# ---------------------------------------------------------------------------
def gru_model_reference(x, params):
    feat = x
    for layer in params["gru_layers"]:
        w_ih, w_hh = layer["w_ih"], layer["w_hh"]
        b_ih, b_hh = layer["b_ih"], layer["b_hh"]
        D = feat.shape[-1]

        def step(h, x_t):
            gi = x_t @ w_ih.T + b_ih
            gh = h @ w_hh.T + b_hh
            r = jax.nn.sigmoid(gi[:, :D] + gh[:, :D])
            z = jax.nn.sigmoid(gi[:, D:2 * D] + gh[:, D:2 * D])
            n = jnp.tanh(gi[:, 2 * D:] + r * gh[:, 2 * D:])
            h_new = (1.0 - z) * n + z * h
            return h_new, h_new

        h0 = jnp.zeros((feat.shape[1], D), jnp.float32)
        _, feat = lax.scan(step, h0, feat)
    pooled = jnp.mean(feat, axis=1)
    logits = pooled @ params["w_cls"].T + params["b_cls"]
    return jax.nn.log_softmax(logits, axis=-1)


def init_params(key, hidden, num_labels, num_layers):
    params = {"gru_layers": []}
    bound = 1.0 / math.sqrt(hidden)
    for _ in range(num_layers):
        key, k1, k2, k3, k4 = jax.random.split(key, 5)
        params["gru_layers"].append({
            "w_ih": jax.random.uniform(k1, (3 * hidden, hidden), jnp.float32,
                                       -bound, bound),
            "w_hh": jax.random.uniform(k2, (3 * hidden, hidden), jnp.float32,
                                       -bound, bound),
            "b_ih": jax.random.uniform(k3, (3 * hidden,), jnp.float32,
                                       -bound, bound),
            "b_hh": jax.random.uniform(k4, (3 * hidden,), jnp.float32,
                                       -bound, bound),
        })
    key, k5, k6 = jax.random.split(key, 3)
    params["w_cls"] = jax.random.uniform(k5, (num_labels, hidden), jnp.float32,
                                         -bound, bound)
    params["b_cls"] = jax.random.uniform(k6, (num_labels,), jnp.float32,
                                         -bound, bound)
    return params


if __name__ == "__main__":
    batch, seq, hidden = 2, 8, 32
    num_labels, num_layers = 5, 2

    key = jax.random.PRNGKey(0)
    key, k_x = jax.random.split(key)
    # Stand-in for text_embbeding(text) output (embedded tokens), f32.
    x = jax.random.normal(k_x, (batch, seq, hidden), jnp.float32)
    params = init_params(key, hidden, num_labels, num_layers)

    ref = jax.block_until_ready(gru_model_reference(x, params))

    # f32 MXU operands (strict check; this is also the v5e-friendly path).
    packed_f32 = prepare_params(params, hidden, num_labels, num_layers,
                                compute_dtype=jnp.float32)
    logits = jax.block_until_ready(gru_model_forward(x, packed_f32))
    assert logits.shape == (batch, num_labels)
    assert jnp.allclose(logits, ref, rtol=1e-3, atol=1e-3), "f32 kernel mismatch"

    # bf16 MXU operands (v6e/v7x): weights stored bf16, gate math stays f32.
    packed_bf16 = prepare_params(params, hidden, num_labels, num_layers,
                                 compute_dtype=jnp.bfloat16)
    logits_bf16 = jax.block_until_ready(gru_model_forward(x, packed_bf16))
    assert logits_bf16.shape == (batch, num_labels)
    assert jnp.allclose(logits_bf16, ref, rtol=5e-2, atol=5e-2), "bf16 kernel mismatch"

    print("KERNEL_OK")
</pallas_src>

<mosaic_0001>
module attributes {stable_mosaic.version = 11 : i64} {
  func.func @gru_stack_kernel(%arg0: i32, %arg1: memref<2x8x128xf32, #tpu.memory_space<vmem>>, %arg2: memref<2x128x384xf32, #tpu.memory_space<vmem>>, %arg3: memref<2x128x384xf32, #tpu.memory_space<vmem>>, %arg4: memref<2x1x384xf32, #tpu.memory_space<vmem>>, %arg5: memref<2x1x128xf32, #tpu.memory_space<vmem>>, %arg6: memref<1x2x128xf32, #tpu.memory_space<vmem>>, %arg7: memref<2x8x128xf32, #tpu.memory_space<vmem>>, %arg8: memref<2x8x384xf32, #tpu.memory_space<vmem>>) attributes {dimension_semantics = [#tpu.dimension_semantics<parallel>], iteration_bounds = array<i64: 1>, scalar_prefetch = 0 : i64, scratch_operands = 2 : i64, tpu.core_type = #tpu.core_type<tc>, window_params = [{transform_indices = @transform_0, window_bounds = array<i64: 2, 8, 128>}, {pipeline_mode = #tpu.pipeline_mode<synchronous>, transform_indices = @transform_1, window_bounds = array<i64: 2, 128, 384>}, {pipeline_mode = #tpu.pipeline_mode<synchronous>, transform_indices = @transform_2, window_bounds = array<i64: 2, 128, 384>}, {pipeline_mode = #tpu.pipeline_mode<synchronous>, transform_indices = @transform_3, window_bounds = array<i64: 2, 1, 384>}, {pipeline_mode = #tpu.pipeline_mode<synchronous>, transform_indices = @transform_4, window_bounds = array<i64: 2, 1, 128>}, {transform_indices = @transform_5, window_bounds = array<i64: 1, 2, 128>}]} {
    %c0 = arith.constant 0 : index
    %c0_0 = arith.constant 0 : index
    %c0_1 = arith.constant 0 : index
    %0 = vector.load %arg1[%c0, %c0_0, %c0_1] : memref<2x8x128xf32, #tpu.memory_space<vmem>>, vector<2x8x128xf32>
    %c0_2 = arith.constant 0 : index
    %c0_3 = arith.constant 0 : index
    %c0_4 = arith.constant 0 : index
    %1 = vector.load %arg7[%c0_2, %c0_3, %c0_4] : memref<2x8x128xf32, #tpu.memory_space<vmem>>, vector<2x8x128xf32>
    tpu.vector_store %arg7[%c0_2, %c0_3, %c0_4], %0 {strides = array<i32>} : memref<2x8x128xf32, #tpu.memory_space<vmem>>, vector<2x8x128xf32>,
    %c0_5 = arith.constant 0 : index
    %c0_6 = arith.constant 0 : index
    %c0_7 = arith.constant 0 : index
    %2 = vector.load %arg2[%c0_5, %c0_6, %c0_7] : memref<2x128x384xf32, #tpu.memory_space<vmem>>, vector<1x128x384xf32>
    %3 = vector.shape_cast %2 : vector<1x128x384xf32> to vector<128x384xf32>
    %c0_8 = arith.constant 0 : index
    %c0_9 = arith.constant 0 : index
    %c0_10 = arith.constant 0 : index
    %4 = vector.load %arg3[%c0_8, %c0_9, %c0_10] : memref<2x128x384xf32, #tpu.memory_space<vmem>>, vector<1x128x384xf32>
    %5 = vector.shape_cast %4 : vector<1x128x384xf32> to vector<128x384xf32>
    %c0_11 = arith.constant 0 : index
    %c0_12 = arith.constant 0 : index
    %c0_13 = arith.constant 0 : index
    %6 = vector.load %arg4[%c0_11, %c0_12, %c0_13] : memref<2x1x384xf32, #tpu.memory_space<vmem>>, vector<1x1x384xf32>
    %7 = vector.shape_cast %6 : vector<1x1x384xf32> to vector<1x384xf32>
    %c0_14 = arith.constant 0 : index
    %c0_15 = arith.constant 0 : index
    %c0_16 = arith.constant 0 : index
    %8 = vector.load %arg5[%c0_14, %c0_15, %c0_16] : memref<2x1x128xf32, #tpu.memory_space<vmem>>, vector<1x1x128xf32>
    %9 = vector.shape_cast %8 : vector<1x1x128xf32> to vector<1x128xf32>
    %c0_17 = arith.constant 0 : index
    %c0_18 = arith.constant 0 : index
    %c0_19 = arith.constant 0 : index
    %10 = vector.load %arg7[%c0_17, %c0_18, %c0_19] : memref<2x8x128xf32, #tpu.memory_space<vmem>>, vector<2x8x128xf32>
    %11 = vector.shape_cast %10 : vector<2x8x128xf32> to vector<16x128xf32>
    %cst = arith.constant dense<0.000000e+00> : vector<16x384xf32>
    %12 = tpu.matmul %11, %3, %cst {dimension_numbers = #tpu.dot_dimension_numbers<[1], [0], [0], [1], [0, 0, 1, 1], [], []>} : vector<16x128xf32>, vector<128x384xf32>, vector<16x384xf32> -> vector<16x384xf32>
    %13 = vector.broadcast %7 : vector<1x384xf32> to vector<16x384xf32>
    %14 = arith.addf %12, %13 : vector<16x384xf32>
    %15 = vector.shape_cast %14 : vector<16x384xf32> to vector<2x8x384xf32>
    %c0_20 = arith.constant 0 : index
    %c0_21 = arith.constant 0 : index
    %c0_22 = arith.constant 0 : index
    %16 = vector.load %arg8[%c0_20, %c0_21, %c0_22] : memref<2x8x384xf32, #tpu.memory_space<vmem>>, vector<2x8x384xf32>
    tpu.vector_store %arg8[%c0_20, %c0_21, %c0_22], %15 {strides = array<i32>} : memref<2x8x384xf32, #tpu.memory_space<vmem>>, vector<2x8x384xf32>,
    %cst_23 = arith.constant 0.000000e+00 : f32
    %17 = vector.broadcast %cst_23 : f32 to vector<8x128xf32>
    %c0_i32 = arith.constant 0 : i32
    %18 = arith.index_cast %c0_i32 : i32 to index
    %c0_24 = arith.constant 0 : index
    %c0_25 = arith.constant 0 : index
    %19 = vector.load %arg8[%18, %c0_24, %c0_25] : memref<2x8x384xf32, #tpu.memory_space<vmem>>, vector<1x8x384xf32>
    %20 = vector.shape_cast %19 : vector<1x8x384xf32> to vector<8x384xf32>
    %cst_26 = arith.constant dense<0.000000e+00> : vector<8x384xf32>
    %21 = tpu.matmul %17, %5, %cst_26 {dimension_numbers = #tpu.dot_dimension_numbers<[1], [0], [0], [1], [0, 0, 1, 1], [], []>} : vector<8x128xf32>, vector<128x384xf32>, vector<8x384xf32> -> vector<8x384xf32>
    %22 = vector.extract_strided_slice %20 {offsets = [0, 0], sizes = [8, 128], strides = [1, 1]} : vector<8x384xf32> to vector<8x128xf32>
    %23 = vector.extract_strided_slice %21 {offsets = [0, 0], sizes = [8, 128], strides = [1, 1]} : vector<8x384xf32> to vector<8x128xf32>
    %24 = arith.addf %22, %23 : vector<8x128xf32>
    %25 = arith.negf %24 : vector<8x128xf32>
    %26 = math.exp %25 : vector<8x128xf32>
    %cst_27 = arith.constant 1.000000e+00 : f32
    %27 = vector.broadcast %cst_27 : f32 to vector<8x128xf32>
    %28 = arith.addf %27, %26 : vector<8x128xf32>
    %29 = arith.divf %27, %28 : vector<8x128xf32>
    %30 = vector.extract_strided_slice %20 {offsets = [0, 128], sizes = [8, 128], strides = [1, 1]} : vector<8x384xf32> to vector<8x128xf32>
    %31 = vector.extract_strided_slice %21 {offsets = [0, 128], sizes = [8, 128], strides = [1, 1]} : vector<8x384xf32> to vector<8x128xf32>
    %32 = arith.addf %30, %31 : vector<8x128xf32>
    %33 = arith.negf %32 : vector<8x128xf32>
    %34 = math.exp %33 : vector<8x128xf32>
    %cst_28 = arith.constant 1.000000e+00 : f32
    %35 = vector.broadcast %cst_28 : f32 to vector<8x128xf32>
    %36 = arith.addf %35, %34 : vector<8x128xf32>
    %37 = arith.divf %35, %36 : vector<8x128xf32>
    %38 = vector.extract_strided_slice %20 {offsets = [0, 256], sizes = [8, 128], strides = [1, 1]} : vector<8x384xf32> to vector<8x128xf32>
    %39 = vector.extract_strided_slice %21 {offsets = [0, 256], sizes = [8, 128], strides = [1, 1]} : vector<8x384xf32> to vector<8x128xf32>
    %40 = vector.broadcast %9 : vector<1x128xf32> to vector<8x128xf32>
    %41 = arith.addf %39, %40 : vector<8x128xf32>
    %42 = arith.mulf %29, %41 : vector<8x128xf32>
    %43 = arith.addf %38, %42 : vector<8x128xf32>
    %44 = math.tanh %43 : vector<8x128xf32>
    %cst_29 = arith.constant 1.000000e+00 : f32
    %45 = vector.broadcast %cst_29 : f32 to vector<8x128xf32>
    %46 = arith.subf %45, %37 : vector<8x128xf32>
    %47 = arith.mulf %46, %44 : vector<8x128xf32>
    %48 = arith.mulf %37, %17 : vector<8x128xf32>
    %49 = arith.addf %47, %48 : vector<8x128xf32>
    %50 = arith.index_cast %c0_i32 : i32 to index
    %c0_30 = arith.constant 0 : index
    %c0_31 = arith.constant 0 : index
    %51 = vector.load %arg7[%50, %c0_30, %c0_31] : memref<2x8x128xf32, #tpu.memory_space<vmem>>, vector<1x8x128xf32>
    %52 = vector.shape_cast %51 : vector<1x8x128xf32> to vector<8x128xf32>
    %53 = vector.shape_cast %49 : vector<8x128xf32> to vector<1x8x128xf32>
    tpu.vector_store %arg7[%50, %c0_30, %c0_31], %53 {strides = array<i32>} : memref<2x8x128xf32, #tpu.memory_space<vmem>>, vector<1x8x128xf32>,
    %c1_i32 = arith.constant 1 : i32
    %54 = arith.index_cast %c1_i32 : i32 to index
    %c0_32 = arith.constant 0 : index
    %c0_33 = arith.constant 0 : index
    %55 = vector.load %arg8[%54, %c0_32, %c0_33] : memref<2x8x384xf32, #tpu.memory_space<vmem>>, vector<1x8x384xf32>
    %56 = vector.shape_cast %55 : vector<1x8x384xf32> to vector<8x384xf32>
    %cst_34 = arith.constant dense<0.000000e+00> : vector<8x384xf32>
    %57 = tpu.matmul %49, %5, %cst_34 {dimension_numbers = #tpu.dot_dimension_numbers<[1], [0], [0], [1], [0, 0, 1, 1], [], []>} : vector<8x128xf32>, vector<128x384xf32>, vector<8x384xf32> -> vector<8x384xf32>
    %58 = vector.extract_strided_slice %56 {offsets = [0, 0], sizes = [8, 128], strides = [1, 1]} : vector<8x384xf32> to vector<8x128xf32>
    %59 = vector.extract_strided_slice %57 {offsets = [0, 0], sizes = [8, 128], strides = [1, 1]} : vector<8x384xf32> to vector<8x128xf32>
    %60 = arith.addf %58, %59 : vector<8x128xf32>
    %61 = arith.negf %60 : vector<8x128xf32>
    %62 = math.exp %61 : vector<8x128xf32>
    %cst_35 = arith.constant 1.000000e+00 : f32
    %63 = vector.broadcast %cst_35 : f32 to vector<8x128xf32>
    %64 = arith.addf %63, %62 : vector<8x128xf32>
    %65 = arith.divf %63, %64 : vector<8x128xf32>
    %66 = vector.extract_strided_slice %56 {offsets = [0, 128], sizes = [8, 128], strides = [1, 1]} : vector<8x384xf32> to vector<8x128xf32>
    %67 = vector.extract_strided_slice %57 {offsets = [0, 128], sizes = [8, 128], strides = [1, 1]} : vector<8x384xf32> to vector<8x128xf32>
    %68 = arith.addf %66, %67 : vector<8x128xf32>
    %69 = arith.negf %68 : vector<8x128xf32>
    %70 = math.exp %69 : vector<8x128xf32>
    %cst_36 = arith.constant 1.000000e+00 : f32
    %71 = vector.broadcast %cst_36 : f32 to vector<8x128xf32>
    %72 = arith.addf %71, %70 : vector<8x128xf32>
    %73 = arith.divf %71, %72 : vector<8x128xf32>
    %74 = vector.extract_strided_slice %56 {offsets = [0, 256], sizes = [8, 128], strides = [1, 1]} : vector<8x384xf32> to vector<8x128xf32>
    %75 = vector.extract_strided_slice %57 {offsets = [0, 256], sizes = [8, 128], strides = [1, 1]} : vector<8x384xf32> to vector<8x128xf32>
    %76 = vector.broadcast %9 : vector<1x128xf32> to vector<8x128xf32>
    %77 = arith.addf %75, %76 : vector<8x128xf32>
    %78 = arith.mulf %65, %77 : vector<8x128xf32>
    %79 = arith.addf %74, %78 : vector<8x128xf32>
    %80 = math.tanh %79 : vector<8x128xf32>
    %cst_37 = arith.constant 1.000000e+00 : f32
    %81 = vector.broadcast %cst_37 : f32 to vector<8x128xf32>
    %82 = arith.subf %81, %73 : vector<8x128xf32>
    %83 = arith.mulf %82, %80 : vector<8x128xf32>
    %84 = arith.mulf %73, %49 : vector<8x128xf32>
    %85 = arith.addf %83, %84 : vector<8x128xf32>
    %86 = arith.index_cast %c1_i32 : i32 to index
    %c0_38 = arith.constant 0 : index
    %c0_39 = arith.constant 0 : index
    %87 = vector.load %arg7[%86, %c0_38, %c0_39] : memref<2x8x128xf32, #tpu.memory_space<vmem>>, vector<1x8x128xf32>
    %88 = vector.shape_cast %87 : vector<1x8x128xf32> to vector<8x128xf32>
    %89 = vector.shape_cast %85 : vector<8x128xf32> to vector<1x8x128xf32>
    tpu.vector_store %arg7[%86, %c0_38, %c0_39], %89 {strides = array<i32>} : memref<2x8x128xf32, #tpu.memory_space<vmem>>, vector<1x8x128xf32>,
    %c2_i32 = arith.constant 2 : i32
    %c1 = arith.constant 1 : index
    %c0_40 = arith.constant 0 : index
    %c0_41 = arith.constant 0 : index
    %90 = vector.load %arg2[%c1, %c0_40, %c0_41] : memref<2x128x384xf32, #tpu.memory_space<vmem>>, vector<1x128x384xf32>
    %91 = vector.shape_cast %90 : vector<1x128x384xf32> to vector<128x384xf32>
    %c1_42 = arith.constant 1 : index
    %c0_43 = arith.constant 0 : index
    %c0_44 = arith.constant 0 : index
    %92 = vector.load %arg3[%c1_42, %c0_43, %c0_44] : memref<2x128x384xf32, #tpu.memory_space<vmem>>, vector<1x128x384xf32>
    %93 = vector.shape_cast %92 : vector<1x128x384xf32> to vector<128x384xf32>
    %c1_45 = arith.constant 1 : index
    %c0_46 = arith.constant 0 : index
    %c0_47 = arith.constant 0 : index
    %94 = vector.load %arg4[%c1_45, %c0_46, %c0_47] : memref<2x1x384xf32, #tpu.memory_space<vmem>>, vector<1x1x384xf32>
    %95 = vector.shape_cast %94 : vector<1x1x384xf32> to vector<1x384xf32>
    %c1_48 = arith.constant 1 : index
    %c0_49 = arith.constant 0 : index
    %c0_50 = arith.constant 0 : index
    %96 = vector.load %arg5[%c1_48, %c0_49, %c0_50] : memref<2x1x128xf32, #tpu.memory_space<vmem>>, vector<1x1x128xf32>
    %97 = vector.shape_cast %96 : vector<1x1x128xf32> to vector<1x128xf32>
    %c0_51 = arith.constant 0 : index
    %c0_52 = arith.constant 0 : index
    %c0_53 = arith.constant 0 : index
    %98 = vector.load %arg7[%c0_51, %c0_52, %c0_53] : memref<2x8x128xf32, #tpu.memory_space<vmem>>, vector<2x8x128xf32>
    %99 = vector.shape_cast %98 : vector<2x8x128xf32> to vector<16x128xf32>
    %cst_54 = arith.constant dense<0.000000e+00> : vector<16x384xf32>
    %100 = tpu.matmul %99, %91, %cst_54 {dimension_numbers = #tpu.dot_dimension_numbers<[1], [0], [0], [1], [0, 0, 1, 1], [], []>} : vector<16x128xf32>, vector<128x384xf32>, vector<16x384xf32> -> vector<16x384xf32>
    %101 = vector.broadcast %95 : vector<1x384xf32> to vector<16x384xf32>
    %102 = arith.addf %100, %101 : vector<16x384xf32>
    %103 = vector.shape_cast %102 : vector<16x384xf32> to vector<2x8x384xf32>
    %c0_55 = arith.constant 0 : index
    %c0_56 = arith.constant 0 : index
    %c0_57 = arith.constant 0 : index
    %104 = vector.load %arg8[%c0_55, %c0_56, %c0_57] : memref<2x8x384xf32, #tpu.memory_space<vmem>>, vector<2x8x384xf32>
    tpu.vector_store %arg8[%c0_55, %c0_56, %c0_57], %103 {strides = array<i32>} : memref<2x8x384xf32, #tpu.memory_space<vmem>>, vector<2x8x384xf32>,
    %cst_58 = arith.constant 0.000000e+00 : f32
    %105 = vector.broadcast %cst_58 : f32 to vector<8x128xf32>
    %c0_i32_59 = arith.constant 0 : i32
    %106 = arith.index_cast %c0_i32_59 : i32 to index
    %c0_60 = arith.constant 0 : index
    %c0_61 = arith.constant 0 : index
    %107 = vector.load %arg8[%106, %c0_60, %c0_61] : memref<2x8x384xf32, #tpu.memory_space<vmem>>, vector<1x8x384xf32>
    %108 = vector.shape_cast %107 : vector<1x8x384xf32> to vector<8x384xf32>
    %cst_62 = arith.constant dense<0.000000e+00> : vector<8x384xf32>
    %109 = tpu.matmul %105, %93, %cst_62 {dimension_numbers = #tpu.dot_dimension_numbers<[1], [0], [0], [1], [0, 0, 1, 1], [], []>} : vector<8x128xf32>, vector<128x384xf32>, vector<8x384xf32> -> vector<8x384xf32>
    %110 = vector.extract_strided_slice %108 {offsets = [0, 0], sizes = [8, 128], strides = [1, 1]} : vector<8x384xf32> to vector<8x128xf32>
    %111 = vector.extract_strided_slice %109 {offsets = [0, 0], sizes = [8, 128], strides = [1, 1]} : vector<8x384xf32> to vector<8x128xf32>
    %112 = arith.addf %110, %111 : vector<8x128xf32>
    %113 = arith.negf %112 : vector<8x128xf32>
    %114 = math.exp %113 : vector<8x128xf32>
    %cst_63 = arith.constant 1.000000e+00 : f32
    %115 = vector.broadcast %cst_63 : f32 to vector<8x128xf32>
    %116 = arith.addf %115, %114 : vector<8x128xf32>
    %117 = arith.divf %115, %116 : vector<8x128xf32>
    %118 = vector.extract_strided_slice %108 {offsets = [0, 128], sizes = [8, 128], strides = [1, 1]} : vector<8x384xf32> to vector<8x128xf32>
    %119 = vector.extract_strided_slice %109 {offsets = [0, 128], sizes = [8, 128], strides = [1, 1]} : vector<8x384xf32> to vector<8x128xf32>
    %120 = arith.addf %118, %119 : vector<8x128xf32>
    %121 = arith.negf %120 : vector<8x128xf32>
    %122 = math.exp %121 : vector<8x128xf32>
    %cst_64 = arith.constant 1.000000e+00 : f32
    %123 = vector.broadcast %cst_64 : f32 to vector<8x128xf32>
    %124 = arith.addf %123, %122 : vector<8x128xf32>
    %125 = arith.divf %123, %124 : vector<8x128xf32>
    %126 = vector.extract_strided_slice %108 {offsets = [0, 256], sizes = [8, 128], strides = [1, 1]} : vector<8x384xf32> to vector<8x128xf32>
    %127 = vector.extract_strided_slice %109 {offsets = [0, 256], sizes = [8, 128], strides = [1, 1]} : vector<8x384xf32> to vector<8x128xf32>
    %128 = vector.broadcast %97 : vector<1x128xf32> to vector<8x128xf32>
    %129 = arith.addf %127, %128 : vector<8x128xf32>
    %130 = arith.mulf %117, %129 : vector<8x128xf32>
    %131 = arith.addf %126, %130 : vector<8x128xf32>
    %132 = math.tanh %131 : vector<8x128xf32>
    %cst_65 = arith.constant 1.000000e+00 : f32
    %133 = vector.broadcast %cst_65 : f32 to vector<8x128xf32>
    %134 = arith.subf %133, %125 : vector<8x128xf32>
    %135 = arith.mulf %134, %132 : vector<8x128xf32>
    %136 = arith.mulf %125, %105 : vector<8x128xf32>
    %137 = arith.addf %135, %136 : vector<8x128xf32>
    %138 = arith.index_cast %c0_i32_59 : i32 to index
    %c0_66 = arith.constant 0 : index
    %c0_67 = arith.constant 0 : index
    %139 = vector.load %arg7[%138, %c0_66, %c0_67] : memref<2x8x128xf32, #tpu.memory_space<vmem>>, vector<1x8x128xf32>
    %140 = vector.shape_cast %139 : vector<1x8x128xf32> to vector<8x128xf32>
    %141 = vector.shape_cast %137 : vector<8x128xf32> to vector<1x8x128xf32>
    tpu.vector_store %arg7[%138, %c0_66, %c0_67], %141 {strides = array<i32>} : memref<2x8x128xf32, #tpu.memory_space<vmem>>, vector<1x8x128xf32>,
    %c1_i32_68 = arith.constant 1 : i32
    %142 = arith.index_cast %c1_i32_68 : i32 to index
    %c0_69 = arith.constant 0 : index
    %c0_70 = arith.constant 0 : index
    %143 = vector.load %arg8[%142, %c0_69, %c0_70] : memref<2x8x384xf32, #tpu.memory_space<vmem>>, vector<1x8x384xf32>
    %144 = vector.shape_cast %143 : vector<1x8x384xf32> to vector<8x384xf32>
    %cst_71 = arith.constant dense<0.000000e+00> : vector<8x384xf32>
    %145 = tpu.matmul %137, %93, %cst_71 {dimension_numbers = #tpu.dot_dimension_numbers<[1], [0], [0], [1], [0, 0, 1, 1], [], []>} : vector<8x128xf32>, vector<128x384xf32>, vector<8x384xf32> -> vector<8x384xf32>
    %146 = vector.extract_strided_slice %144 {offsets = [0, 0], sizes = [8, 128], strides = [1, 1]} : vector<8x384xf32> to vector<8x128xf32>
    %147 = vector.extract_strided_slice %145 {offsets = [0, 0], sizes = [8, 128], strides = [1, 1]} : vector<8x384xf32> to vector<8x128xf32>
    %148 = arith.addf %146, %147 : vector<8x128xf32>
    %149 = arith.negf %148 : vector<8x128xf32>
    %150 = math.exp %149 : vector<8x128xf32>
    %cst_72 = arith.constant 1.000000e+00 : f32
    %151 = vector.broadcast %cst_72 : f32 to vector<8x128xf32>
    %152 = arith.addf %151, %150 : vector<8x128xf32>
    %153 = arith.divf %151, %152 : vector<8x128xf32>
    %154 = vector.extract_strided_slice %144 {offsets = [0, 128], sizes = [8, 128], strides = [1, 1]} : vector<8x384xf32> to vector<8x128xf32>
    %155 = vector.extract_strided_slice %145 {offsets = [0, 128], sizes = [8, 128], strides = [1, 1]} : vector<8x384xf32> to vector<8x128xf32>
    %156 = arith.addf %154, %155 : vector<8x128xf32>
    %157 = arith.negf %156 : vector<8x128xf32>
    %158 = math.exp %157 : vector<8x128xf32>
    %cst_73 = arith.constant 1.000000e+00 : f32
    %159 = vector.broadcast %cst_73 : f32 to vector<8x128xf32>
    %160 = arith.addf %159, %158 : vector<8x128xf32>
    %161 = arith.divf %159, %160 : vector<8x128xf32>
    %162 = vector.extract_strided_slice %144 {offsets = [0, 256], sizes = [8, 128], strides = [1, 1]} : vector<8x384xf32> to vector<8x128xf32>
    %163 = vector.extract_strided_slice %145 {offsets = [0, 256], sizes = [8, 128], strides = [1, 1]} : vector<8x384xf32> to vector<8x128xf32>
    %164 = vector.broadcast %97 : vector<1x128xf32> to vector<8x128xf32>
    %165 = arith.addf %163, %164 : vector<8x128xf32>
    %166 = arith.mulf %153, %165 : vector<8x128xf32>
    %167 = arith.addf %162, %166 : vector<8x128xf32>
    %168 = math.tanh %167 : vector<8x128xf32>
    %cst_74 = arith.constant 1.000000e+00 : f32
    %169 = vector.broadcast %cst_74 : f32 to vector<8x128xf32>
    %170 = arith.subf %169, %161 : vector<8x128xf32>
    %171 = arith.mulf %170, %168 : vector<8x128xf32>
    %172 = arith.mulf %161, %137 : vector<8x128xf32>
    %173 = arith.addf %171, %172 : vector<8x128xf32>
    %174 = arith.index_cast %c1_i32_68 : i32 to index
    %c0_75 = arith.constant 0 : index
    %c0_76 = arith.constant 0 : index
    %175 = vector.load %arg7[%174, %c0_75, %c0_76] : memref<2x8x128xf32, #tpu.memory_space<vmem>>, vector<1x8x128xf32>
    %176 = vector.shape_cast %175 : vector<1x8x128xf32> to vector<8x128xf32>
    %177 = vector.shape_cast %173 : vector<8x128xf32> to vector<1x8x128xf32>
    tpu.vector_store %arg7[%174, %c0_75, %c0_76], %177 {strides = array<i32>} : memref<2x8x128xf32, #tpu.memory_space<vmem>>, vector<1x8x128xf32>,
    %c2_i32_77 = arith.constant 2 : i32
    %178 = tpu.iota {dimensions = array<i32: 0>} : vector<8x128xi32>
    %c8_i32 = arith.constant 8 : i32
    %179 = arith.muli %arg0, %c8_i32 : i32
    %180 = vector.broadcast %179 : i32 to vector<8x128xi32>
    %181 = arith.addi %180, %178 : vector<8x128xi32>
    %c8_i32_78 = arith.constant 8 : i32
    %182 = vector.broadcast %c8_i32_78 : i32 to vector<8x128xi32>
    %183 = arith.cmpi slt, %181, %182 : vector<8x128xi32>
    %184 = vector.shape_cast %183 : vector<8x128xi1> to vector<1x8x128xi1>
    %c0_79 = arith.constant 0 : index
    %c0_80 = arith.constant 0 : index
    %c0_81 = arith.constant 0 : index
    %185 = vector.load %arg7[%c0_79, %c0_80, %c0_81] : memref<2x8x128xf32, #tpu.memory_space<vmem>>, vector<2x8x128xf32>
    %cst_82 = arith.constant 0.000000e+00 : f32
    %186 = vector.shape_cast %184 : vector<1x8x128xi1> to vector<1x8x128xi1>
    %187 = vector.broadcast %186 : vector<1x8x128xi1> to vector<2x8x128xi1>
    %188 = vector.broadcast %cst_82 : f32 to vector<2x8x128xf32>
    %189 = arith.select %187, %185, %188 : vector<2x8x128xi1>, vector<2x8x128xf32>
    %cst_83 = arith.constant dense<0.000000e+00> : vector<2x128xf32>
    %190 = vector.multi_reduction <add>, %189, %cst_83 [1] : vector<2x8x128xf32> to vector<2x128xf32>
    %c0_84 = arith.constant 0 : index
    %c0_85 = arith.constant 0 : index
    %c0_86 = arith.constant 0 : index
    %191 = vector.load %arg6[%c0_84, %c0_85, %c0_86] : memref<1x2x128xf32, #tpu.memory_space<vmem>>, vector<1x2x128xf32>
    %192 = vector.shape_cast %191 : vector<1x2x128xf32> to vector<2x128xf32>
    %193 = vector.shape_cast %190 : vector<2x128xf32> to vector<1x2x128xf32>
    tpu.vector_store %arg6[%c0_84, %c0_85, %c0_86], %193 {strides = array<i32>} : memref<1x2x128xf32, #tpu.memory_space<vmem>>, vector<1x2x128xf32>,
    return
  }
  func.func @transform_0(%arg0: i32) -> (i32, i32, i32) {
    %c0_i32 = arith.constant 0 : i32
    %c0_i32_0 = arith.constant 0 : i32
    %c0_i32_1 = arith.constant 0 : i32
    return %c0_i32, %arg0, %c0_i32_0 : i32, i32, i32
  }
  func.func @transform_1(%arg0: i32) -> (i32, i32, i32) {
    %c0_i32 = arith.constant 0 : i32
    %c0_i32_0 = arith.constant 0 : i32
    %c0_i32_1 = arith.constant 0 : i32
    %c0_i32_2 = arith.constant 0 : i32
    return %c0_i32, %c0_i32_0, %c0_i32_1 : i32, i32, i32
  }
  func.func @transform_2(%arg0: i32) -> (i32, i32, i32) {
    %c0_i32 = arith.constant 0 : i32
    %c0_i32_0 = arith.constant 0 : i32
    %c0_i32_1 = arith.constant 0 : i32
    %c0_i32_2 = arith.constant 0 : i32
    return %c0_i32, %c0_i32_0, %c0_i32_1 : i32, i32, i32
  }
  func.func @transform_3(%arg0: i32) -> (i32, i32, i32) {
    %c0_i32 = arith.constant 0 : i32
    %c0_i32_0 = arith.constant 0 : i32
    %c0_i32_1 = arith.constant 0 : i32
    %c0_i32_2 = arith.constant 0 : i32
    return %c0_i32, %c0_i32_0, %c0_i32_1 : i32, i32, i32
  }
  func.func @transform_4(%arg0: i32) -> (i32, i32, i32) {
    %c0_i32 = arith.constant 0 : i32
    %c0_i32_0 = arith.constant 0 : i32
    %c0_i32_1 = arith.constant 0 : i32
    %c0_i32_2 = arith.constant 0 : i32
    return %c0_i32, %c0_i32_0, %c0_i32_1 : i32, i32, i32
  }
  func.func @transform_5(%arg0: i32) -> (i32, i32, i32) {
    %c0_i32 = arith.constant 0 : i32
    %c0_i32_0 = arith.constant 0 : i32
    %c0_i32_1 = arith.constant 0 : i32
    return %arg0, %c0_i32, %c0_i32_0 : i32, i32, i32
  }
}

</mosaic_0001>

<bundles_post_ra>
// kernel: tpu_custom_call.1
= control target key start
LH: loop header
LB: loop body
LE: loop exit
PB: predicated region body
PF: predicated region fallthrough
CT: control target
= control target key end

     0   :  { %10 = vsyncpa [#allocation5], 0  ;;  %s2390_s0 = inlined_call_operand.hbm [shape: f32[2,8,128], index: 0, kind: input, shape index: {}]   ;;  %s2391_s1 = inlined_call_operand.hbm [shape: f32[2,128,384], index: 1, kind: input, shape index: {}]   ;;  %s2392_s2 = inlined_call_operand.hbm [shape: f32[2,128,384], index: 2, kind: input, shape index: {}]   ;;  %s2393_s3 = inlined_call_operand.hbm [shape: f32[2,1,384], index: 3, kind: input, shape index: {}]   ;;  %s2394_s4 = inlined_call_operand.vmem [shape: f32[2,1,128], index: 4, kind: input, shape index: {}]   ;;  %s2395_s5 = inlined_call_operand.hbm [shape: f32[1,2,128], index: 5, kind: output, shape index: {}]  }
   0x1   :  { %11 = vsyncpa [#allocation8], 0 }
   0x2   :  { %12 = vsyncpa [#allocation11], 0 }
   0x3   :  { %13 = vsyncpa [#allocation6], 0  ;;  %s1847_s18 = smov [#allocation7]  }
   0x4   :  { %s31_s19 = sshll.u32 %s1847_s18, 4  ;;  %s32_s19 = int_to_ptr.vmem [resolvable:$true] %s31_s19 }
   0x5   :  { %s1747_s20 = scalar_lea.vmem %s32_s19, 12288  ;;  %p1752_p1 = scmp.lt.s32.totalorder %s32_s19, %s32_s19 }
   0x6   :  { %p1748_p0 = scmp.ne.s32.totalorder %s32_s19, %s1747_s20  ;;  %p1753_p2 = scmp.lt.s32.totalorder %s1747_s20, %s1747_s20 }
   0x8   :  { %p1754_p3 = por %p1753_p2, %p1752_p1 }
   0xa   :  { %p1755_p4 = pnand %p1754_p3, %p1748_p0 }
   0xc   :  { %1758 = shalt.err (!%p1755_p4)
}
   0xd   :  { %s1848_s21 = smov 384   ;;  %s1849_s22 = smov 24  }
   0xe   :  { %37 = dma.hbm_to_vmem [thread:$0]  %s2391_s1, 12288, %s32_s19, [#allocation8], %s1848_s21, %s1848_s21, %s1849_s22  }
   0xf   :  { %s1850_s25 = smov [#allocation4]  }
  0x10   :  { %s19_s26 = sshll.u32 %s1850_s25, 4  ;;  %s20_s26 = int_to_ptr.vmem [resolvable:$true] %s19_s26 }
  0x11   :  { %s1767_s27 = scalar_lea.vmem %s20_s26, 256  ;;  %p1772_p6 = scmp.lt.s32.totalorder %s20_s26, %s20_s26 }
  0x12   :  { %p1768_p5 = scmp.ne.s32.totalorder %s20_s26, %s1767_s27  ;;  %p1773_p7 = scmp.lt.s32.totalorder %s1767_s27, %s1767_s27 }
  0x14   :  { %p1774_p8 = por %p1773_p7, %p1772_p6 }
  0x16   :  { %p1775_p9 = pnand %p1774_p8, %p1768_p5 }
  0x18   :  { %1778 = shalt.err (!%p1775_p9)
}
  0x19   :  { %s1851_s28 = smov 128   ;;  %s1852_s29 = smov 8  }
  0x1a   :  { %25 = dma.hbm_to_vmem [thread:$0]  %s2390_s0, 256, %s20_s26, [#allocation5], %s1851_s28, %s1851_s28, %s1852_s29  }
  0x1b   :  { %s1853_s7 = smov [#allocation9]   ;;  %s1854_s9 = smov [#allocation10]  }
  0x1c   :  { %s43_s8 = sshll.u32 %s1853_s7, 4  ;;  %s55_s1 = sshll.u32 %s1854_s9, 4  ;;  %s44_s8 = int_to_ptr.vmem [resolvable:$true] %s43_s8  ;;  %s56_s1 = int_to_ptr.vmem [resolvable:$true] %s55_s1 }
  0x1d   :  { %s1787_s10 = scalar_lea.vmem %s44_s8, 12288  ;;  %p1792_p11 = scmp.lt.s32.totalorder %s44_s8, %s44_s8 }
  0x1e   :  { %p1788_p10 = scmp.ne.s32.totalorder %s44_s8, %s1787_s10  ;;  %p1793_p12 = scmp.lt.s32.totalorder %s1787_s10, %s1787_s10 }
  0x20   :  { %p1794_p13 = por %p1793_p12, %p1792_p11 }
  0x22   :  { %p1795_p0 = pnand %p1794_p13, %p1788_p10 }
  0x24   :  { %1798 = shalt.err (!%p1795_p0)
}
  0x25   :  { %49 = dma.hbm_to_vmem [thread:$0]  %s2392_s2, 12288, %s44_s8, [#allocation8], %s1848_s21, %s1848_s21, %s1849_s22  }
  0x26   :  { %s1807_s0 = scalar_lea.vmem %s56_s1, 96  ;;  %p1812_p2 = scmp.lt.s32.totalorder %s56_s1, %s56_s1 }
  0x27   :  { %p1808_p1 = scmp.ne.s32.totalorder %s56_s1, %s1807_s0  ;;  %p1813_p3 = scmp.lt.s32.totalorder %s1807_s0, %s1807_s0 }
  0x29   :  { %p1814_p4 = por %p1813_p3, %p1812_p2 }
  0x2b   :  { %p1815_p5 = pnand %p1814_p4, %p1808_p1 }
  0x2d   :  { %1818 = shalt.err (!%p1815_p5)
}
  0x2e   :  { %s1855_s13 = smov 48   ;;  %s1856_s14 = smov 3  }
  0x2f   :  { %61 = dma.hbm_to_vmem [thread:$0]  %s2393_s3, 96, %s56_s1, [#allocation11], %s1855_s13, %s1855_s13, %s1856_s14  }
  0x30   :  { %1839 = dma.done.wait [#allocation5], 256  }
  0x31   :  { %1840 = vsyncadd [#allocation5], 4294967040 }
  0x32   :  { %1841 = dma.done.wait [#allocation8], 24576  }
  0x33   :  { %1842 = vsyncadd [#allocation8], 4294942720 }
  0x34   :  { %1843 = dma.done.wait [#allocation11], 96  }
  0x35   :  { %1844 = vsyncadd [#allocation11], 4294967200  ;;  %v1857_v0 = vmov 0.0   ;;  %v126_v1 = vld [vmem:[#allocation7 + $0x170] sm:$0xff]  ;;  %v125_v2 = vld [vmem:[#allocation7 + $0x168] sm:$0xff]  ;;  %vm1858_vm0 = vmmov 0  }
  0x36   :  { %260 = vmatprep.mubr.f32.mxu0 %v1857_v0  ;;  %v123_v3 = vld [vmem:[#allocation7 + $0x158] sm:$0xff]  ;;  %196 = vmatprep.subr.mxu0 %v126_v1  ;;  %v122_v4 = vld [vmem:[#allocation7 + $0x150] sm:$0xff]  ;;  %v120_v5 = vld [vmem:[#allocation7 + $0x140] sm:$0xff]  ;;  %vm1340_vm1 = vcmask 1041409  }
  0x37   :  { %197 = vmatpush1.msra.mxu0 %v125_v2  ;;  %v119_v6 = vld [vmem:[#allocation7 + $0x138] sm:$0xff]  ;;  %v117_v7 = vld [vmem:[#allocation7 + $0x128] sm:$0xff]  ;;  %v116_v8 = vld [vmem:[#allocation7 + $0x120] sm:$0xff] }
  0x38   :  { %198 = vmatprep.subr.mxu0 %v123_v3  ;;  %v114_v9 = vld [vmem:[#allocation7 + $0x110] sm:$0xff]  ;;  %v113_v10 = vld [vmem:[#allocation7 + $0x108] sm:$0xff]  ;;  %v111_v11 = vld [vmem:[#allocation7 + $0xf8] sm:$0xff] }
  0x39   :  { %199 = vmatpush1.msra.mxu0 %v122_v4  ;;  %v110_v12 = vld [vmem:[#allocation7 + $0xf0] sm:$0xff]  ;;  %v108_v13 = vld [vmem:[#allocation7 + $0xe0] sm:$0xff]  ;;  %v127_v14 = vld [vmem:[#allocation7 + $0x178] sm:$0xff] }
  0x3a   :  { %200 = vmatprep.subr.mxu0 %v120_v5  ;;  %v107_v15 = vld [vmem:[#allocation7 + $0xd8] sm:$0xff]  ;;  %1476 = vmatprep.subr.mxu1 %v127_v14  ;;  %v124_v16 = vld [vmem:[#allocation7 + $0x160] sm:$0xff]  ;;  %v105_v17 = vld [vmem:[#allocation7 + $0xc8] sm:$0xff] }
  0x3b   :  { %201 = vmatpush1.msra.mxu0 %v119_v6  ;;  %1477 = vmatpush3.msra.mxu1 %v127_v14  ;;  %v121_v18 = vld [vmem:[#allocation7 + $0x148] sm:$0xff]  ;;  %v104_v19 = vld [vmem:[#allocation7 + $0xc0] sm:$0xff]  ;;  %v102_v20 = vld [vmem:[#allocation7 + $0xb0] sm:$0xff] }
  0x3c   :  { %202 = vmatprep.subr.mxu0 %v117_v7  ;;  %1478 = vmatprep.subr.mxu1 %v124_v16  ;;  %v118_v21 = vld [vmem:[#allocation7 + $0x130] sm:$0xff]  ;;  %v101_v22 = vld [vmem:[#allocation7 + $0xa8] sm:$0xff]  ;;  %v99_v23 = vld [vmem:[#allocation7 + $0x98] sm:$0xff] }
  0x3d   :  { %203 = vmatpush1.msra.mxu0 %v116_v8  ;;  %1479 = vmatpush3.msra.mxu1 %v124_v16  ;;  %v115_v24 = vld [vmem:[#allocation7 + $0x118] sm:$0xff]  ;;  %v98_v25 = vld [vmem:[#allocation7 + $0x90] sm:$0xff]  ;;  %v96_v26 = vld [vmem:[#allocation7 + $0x80] sm:$0xff] }
  0x3e   :  { %204 = vmatprep.subr.mxu0 %v114_v9  ;;  %1480 = vmatprep.subr.mxu1 %v121_v18  ;;  %v112_v27 = vld [vmem:[#allocation7 + $0x100] sm:$0xff]  ;;  %v95_v28 = vld [vmem:[#allocation7 + $0x78] sm:$0xff]  ;;  %v93_v29 = vld [vmem:[#allocation7 + $0x68] sm:$0xff] }
  0x3f   :  { %205 = vmatpush1.msra.mxu0 %v113_v10  ;;  %1481 = vmatpush3.msra.mxu1 %v121_v18  ;;  %v109_v30 = vld [vmem:[#allocation7 + $0xe8] sm:$0xff]  ;;  %v92_v31 = vld [vmem:[#allocation7 + $0x60] sm:$0xff]  ;;  %v90_v32 = vld [vmem:[#allocation7 + $0x50] sm:$0xff] }
  0x40   :  { %206 = vmatprep.subr.mxu0 %v111_v11  ;;  %1482 = vmatprep.subr.mxu1 %v118_v21  ;;  %v106_v33 = vld [vmem:[#allocation7 + $0xd0] sm:$0xff]  ;;  %v89_v34 = vld [vmem:[#allocation7 + $0x48] sm:$0xff]  ;;  %v87_v35 = vld [vmem:[#allocation7 + $0x38] sm:$0xff] }
  0x41   :  { %207 = vmatpush1.msra.mxu0 %v110_v12  ;;  %1483 = vmatpush3.msra.mxu1 %v118_v21  ;;  %v103_v36 = vld [vmem:[#allocation7 + $0xb8] sm:$0xff]  ;;  %v86_v37 = vld [vmem:[#allocation7 + $0x30] sm:$0xff]  ;;  %v84_v38 = vld [vmem:[#allocation7 + $0x20] sm:$0xff] }
  0x42   :  { %208 = vmatprep.subr.mxu0 %v108_v13  ;;  %1484 = vmatprep.subr.mxu1 %v115_v24  ;;  %v100_v39 = vld [vmem:[#allocation7 + $0xa0] sm:$0xff]  ;;  %v83_v40 = vld [vmem:[#allocation7 + $0x18] sm:$0xff]  ;;  %v81_v41 = vld [vmem:[#allocation7 + $0x8] sm:$0xff] }
  0x43   :  { %209 = vmatpush1.msra.mxu0 %v107_v15  ;;  %1485 = vmatpush3.msra.mxu1 %v115_v24  ;;  %v97_v42 = vld [vmem:[#allocation7 + $0x88] sm:$0xff]  ;;  %v80_v43 = vld [vmem:[#allocation7] sm:$0xff]  ;;  %v76_v44 = vld [vmem:[#allocation4] sm:$0xff] }
  0x44   :  { %210 = vmatprep.subr.mxu0 %v105_v17  ;;  %1486 = vmatprep.subr.mxu1 %v112_v27  ;;  %v1909_v45 = vld [vmem:[#allocation9 + $0x170] sm:$0xff]  ;;  %v1911_v46 = vld [vmem:[#allocation9 + $0x168] sm:$0xff]  ;;  %v1913_v48 = vld [vmem:[#allocation9 + $0x158] sm:$0xff] }
  0x45   :  { %211 = vmatpush1.msra.mxu0 %v104_v19  ;;  %1487 = vmatpush3.msra.mxu1 %v112_v27  ;;  %v94_v47 = vld [vmem:[#allocation7 + $0x70] sm:$0xff]  ;;  %v91_v50 = vld [vmem:[#allocation7 + $0x58] sm:$0xff]  ;;  %v1919_v51 = vld [vmem:[#allocation9 + $0x140] sm:$0xff] }
  0x46   :  { %212 = vmatprep.subr.mxu0 %v102_v20  ;;  %1488 = vmatprep.subr.mxu1 %v109_v30  ;;  %v1916_v49 = vld [vmem:[#allocation9 + $0x150] sm:$0xff]  ;;  %v1922_v52 = vld [vmem:[#allocation9 + $0x138] sm:$0xff]  ;;  %v88_v53 = vld [vmem:[#allocation7 + $0x40] sm:$0xff] }
  0x47   :  { %213 = vmatpush1.msra.mxu0 %v101_v22  ;;  %1489 = vmatpush3.msra.mxu1 %v109_v30  ;;  %v1925_v54 = vld [vmem:[#allocation9 + $0x128] sm:$0xff]  ;;  %v1928_v55 = vld [vmem:[#allocation9 + $0x120] sm:$0xff]  ;;  %v1931_v56 = vld [vmem:[#allocation9 + $0x110] sm:$0xff] }
  0x48   :  { %214 = vmatprep.subr.mxu0 %v99_v23  ;;  %1490 = vmatprep.subr.mxu1 %v106_v33  ;;  %v77_v57 = vld [vmem:[#allocation4 + $0x8] sm:$0xff]  ;;  %v1934_v58 = vld [vmem:[#allocation9 + $0x108] sm:$0xff]  ;;  %v1941_v61 = vld [vmem:[#allocation9 + $0xf0] sm:$0xff] }
  0x49   :  { %215 = vmatpush1.msra.mxu0 %v98_v25  ;;  %1491 = vmatpush3.msra.mxu1 %v106_v33  ;;  %v85_v59 = vld [vmem:[#allocation7 + $0x28] sm:$0xff]  ;;  %v1938_v60 = vld [vmem:[#allocation9 + $0xf8] sm:$0xff]  ;;  %v82_v62 = vld [vmem:[#allocation7 + $0x10] sm:$0xff] }
  0x4a   :  { %216 = vmatprep.subr.mxu0 %v96_v26  ;;  %1492 = vmatprep.subr.mxu1 %v103_v36  ;;  %v1944_v63 = vld [vmem:[#allocation9 + $0xe0] sm:$0xff]  ;;  %v1947_v1 = vld [vmem:[#allocation9 + $0xd8] sm:$0xff]  ;;  %v1950_v2 = vld [vmem:[#allocation9 + $0xc8] sm:$0xff] }
  0x4b   :  { %217 = vmatpush1.msra.mxu0 %v95_v28  ;;  %1493 = vmatpush3.msra.mxu1 %v103_v36  ;;  %v1953_v3 = vld [vmem:[#allocation9 + $0xc0] sm:$0xff]  ;;  %v1956_v4 = vld [vmem:[#allocation9 + $0xb0] sm:$0xff]  ;;  %v1959_v5 = vld [vmem:[#allocation9 + $0xa8] sm:$0xff] }
  0x4c   :  { %218 = vmatprep.subr.mxu0 %v93_v29  ;;  %1494 = vmatprep.subr.mxu1 %v100_v39  ;;  %v1962_v6 = vld [vmem:[#allocation9 + $0x178] sm:$0xff]  ;;  %v1968_v8 = vld [vmem:[#allocation9 + $0x90] sm:$0xff]  ;;  %v1971_v9 = vld [vmem:[#allocation9 + $0x160] sm:$0xff] }
  0x4d   :  { %219 = vmatpush1.msra.mxu0 %v92_v31  ;;  %1495 = vmatpush3.msra.mxu1 %v100_v39  ;;  %v1965_v7 = vld [vmem:[#allocation9 + $0x98] sm:$0xff]  ;;  %v1974_v10 = vld [vmem:[#allocation9 + $0x80] sm:$0xff]  ;;  %v1981_v12 = vld [vmem:[#allocation9 + $0x148] sm:$0xff] }
  0x4e   :  { %220 = vmatprep.subr.mxu0 %v90_v32  ;;  %1496 = vmatprep.subr.mxu1 %v97_v42  ;;  %v1978_v11 = vld [vmem:[#allocation9 + $0x78] sm:$0xff]  ;;  %v1984_v13 = vld [vmem:[#allocation9 + $0x68] sm:$0xff]  ;;  %v1988_v14 = vld [vmem:[#allocation9 + $0x60] sm:$0xff] }
  0x4f   :  { %221 = vmatpush1.msra.mxu0 %v89_v34  ;;  %1497 = vmatpush3.msra.mxu1 %v97_v42  ;;  %v1991_v15 = vld [vmem:[#allocation9 + $0x130] sm:$0xff]  ;;  %v1998_v17 = vld [vmem:[#allocation9 + $0x48] sm:$0xff]  ;;  %v2001_v18 = vld [vmem:[#allocation9 + $0x118] sm:$0xff] }
  0x50   :  { %222 = vmatprep.subr.mxu0 %v87_v35  ;;  %1498 = vmatprep.subr.mxu1 %v94_v47  ;;  %v1994_v16 = vld [vmem:[#allocation9 + $0x50] sm:$0xff]  ;;  %v2004_v19 = vld [vmem:[#allocation9 + $0x38] sm:$0xff]  ;;  %v2011_v21 = vld [vmem:[#allocation9 + $0x100] sm:$0xff] }
  0x51   :  { %223 = vmatpush1.msra.mxu0 %v86_v37  ;;  %1499 = vmatpush3.msra.mxu1 %v94_v47  ;;  %v2008_v20 = vld [vmem:[#allocation9 + $0x30] sm:$0xff]  ;;  %v2014_v22 = vld [vmem:[#allocation9 + $0x20] sm:$0xff]  ;;  %v2018_v23 = vld [vmem:[#allocation9 + $0x18] sm:$0xff]  ;;  %v181_v37 = vlaneseq }
  0x52   :  { %224 = vmatprep.subr.mxu0 %v84_v38  ;;  %1500 = vmatprep.subr.mxu1 %v91_v50  ;;  %v2021_v24 = vld [vmem:[#allocation9 + $0xe8] sm:$0xff]  ;;  %v2028_v26 = vld [vmem:[#allocation9] sm:$0xff]  ;;  %v2031_v27 = vld [vmem:[#allocation9 + $0xd0] sm:$0xff] }
  0x53   :  { %225 = vmatpush1.msra.mxu0 %v83_v40  ;;  %1501 = vmatpush3.msra.mxu1 %v91_v50  ;;  %v2024_v25 = vld [vmem:[#allocation9 + $0x8] sm:$0xff]  ;;  %v2037_v28 = vld [vmem:[#allocation9 + $0xb8] sm:$0xff]  ;;  %v2043_v29 = vld [vmem:[#allocation9 + $0xa0] sm:$0xff]  ;;  %v2134_v38 = vshrl.u32 %v181_v37, 7 }
  0x54   :  { %226 = vmatprep.subr.mxu0 %v81_v41  ;;  %1502 = vmatprep.subr.mxu1 %v88_v53  ;;  %v2049_v30 = vld [vmem:[#allocation9 + $0x88] sm:$0xff]  ;;  %v2055_v31 = vld [vmem:[#allocation9 + $0x70] sm:$0xff]  ;;  %v2061_v32 = vld [vmem:[#allocation9 + $0x58] sm:$0xff] }
  0x55   :  { %227 = vmatpush1.msra.mxu0 %v80_v43  ;;  %1503 = vmatpush3.msra.mxu1 %v88_v53  ;;  %v2067_v33 = vld [vmem:[#allocation9 + $0x40] sm:$0xff]  ;;  %v133_v34 = vld [vmem:[#allocation9 + $0x28] sm:$0xff]  ;;  %v130_v35 = vld [vmem:[#allocation9 + $0x10] sm:$0xff]  ;;  %v183_v40 = vsub.s32 0, %v2134_v38  ;;  %v187_v42 = vsub.s32 1, %v2134_v38 }
  0x56   :  { %261 = vmatmul.mubr.f32.vlgmr.msra.gmra.mxu0 %v76_v44  ;;  %357 = vmatprep.subr.mxu0 %v1909_v45  ;;  %v743_v36 = vld [vmem:[#allocation7 + $0x2f0] sm:$0xff]  ;;  %v176_v41 = vld [vmem:[#allocation10] sm:$0x7] }
  0x57   :  { %358 = vmatpush1.msra.mxu0 %v1911_v46  ;;  %266 = vmatprep.mubr.f32.mxu0 %v1857_v0  ;;  %v188_v47 = vrot.slane %v176_v41, %v187_v42  ;;  %v713_v37 = vld [vmem:[#allocation7 + $0x200] sm:$0xff] }
  0x58   :  { %359 = vmatprep.subr.mxu0 %v1913_v48  ;;  %1504 = vmatprep.subr.mxu1 %v85_v59 }
  0x59   :  { %360 = vmatpush1.msra.mxu0 %v1916_v49  ;;  %1505 = vmatpush3.msra.mxu1 %v85_v59 }
  0x5a   :  { %361 = vmatprep.subr.mxu0 %v1919_v51  ;;  %267 = vmatmul.mubr.f32.gmra.mxu0 %v77_v57 }
  0x5b   :  { %362 = vmatpush1.msra.mxu0 %v1922_v52  ;;  %1506 = vmatprep.subr.mxu1 %v82_v62 }
  0x5c   :  { %363 = vmatprep.subr.mxu0 %v1925_v54  ;;  %1507 = vmatpush3.msra.mxu1 %v82_v62 }
  0x5d   :  { %364 = vmatpush1.msra.mxu0 %v1928_v55  ;;  %1508 = vmatprep.mubr.f32.mxu1 %v76_v44  ;;  %v184_v44 = vrot.slane %v176_v41, %v183_v40 }
  0x5e   :  { %365 = vmatprep.subr.mxu0 %v1931_v56  ;;  %1511 = vmatprep.subr.mxu1 %v1857_v0 }
  0x5f   :  { %366 = vmatpush1.msra.mxu0 %v1934_v58  ;;  %1509 = vmatmul.mubr.f32.vlgmr.msra.gmra.mxu1 %v77_v57 }
  0x60   :  { %367 = vmatprep.subr.mxu0 %v1938_v60  ;;  %421 = vmatprep.mubr.f32.mxu0 %v1857_v0 }
  0x61   :  { %368 = vmatpush1.msra.mxu0 %v1941_v61  ;;  %1512 = vmatpush3.msra.mxu1 %v1962_v6 }
  0x62   :  { %369 = vmatprep.subr.mxu0 %v1944_v63  ;;  %1513 = vmatprep.subr.mxu1 %v1857_v0 }
  0x63   :  { %370 = vmatpush1.msra.mxu0 %v1947_v1  ;;  %1514 = vmatpush3.msra.mxu1 %v1971_v9 }
  0x64   :  { %371 = vmatprep.subr.mxu0 %v1950_v2  ;;  %1515 = vmatprep.subr.mxu1 %v1857_v0 }
  0x65   :  { %372 = vmatpush1.msra.mxu0 %v1953_v3  ;;  %1516 = vmatpush3.msra.mxu1 %v1981_v12 }
  0x66   :  { %373 = vmatprep.subr.mxu0 %v1956_v4  ;;  %1517 = vmatprep.subr.mxu1 %v1857_v0 }
  0x67   :  { %374 = vmatpush1.msra.mxu0 %v1959_v5  ;;  %1518 = vmatpush3.msra.mxu1 %v1991_v15 }
  0x68   :  { %375 = vmatprep.subr.mxu0 %v1965_v7  ;;  %1519 = vmatprep.subr.mxu1 %v1857_v0 }
  0x69   :  { %376 = vmatpush1.msra.mxu0 %v1968_v8  ;;  %1520 = vmatpush3.msra.mxu1 %v2001_v18 }
  0x6a   :  { %377 = vmatprep.subr.mxu0 %v1974_v10  ;;  %1521 = vmatprep.subr.mxu1 %v1857_v0 }
  0x6b   :  { %378 = vmatpush1.msra.mxu0 %v1978_v11  ;;  %1522 = vmatpush3.msra.mxu1 %v2011_v21 }
  0x6c   :  { %379 = vmatprep.subr.mxu0 %v1984_v13  ;;  %1523 = vmatprep.subr.mxu1 %v1857_v0 }
  0x6d   :  { %380 = vmatpush1.msra.mxu0 %v1988_v14  ;;  %1524 = vmatpush3.msra.mxu1 %v2021_v24 }
  0x6e   :  { %381 = vmatprep.subr.mxu0 %v1994_v16  ;;  %1525 = vmatprep.subr.mxu1 %v1857_v0 }
  0x6f   :  { %382 = vmatpush1.msra.mxu0 %v1998_v17  ;;  %1526 = vmatpush3.msra.mxu1 %v2031_v27 }
  0x70   :  { %383 = vmatprep.subr.mxu0 %v2004_v19  ;;  %1527 = vmatprep.subr.mxu1 %v1857_v0 }
  0x71   :  { %384 = vmatpush1.msra.mxu0 %v2008_v20  ;;  %1528 = vmatpush3.msra.mxu1 %v2037_v28 }
  0x72   :  { %385 = vmatprep.subr.mxu0 %v2014_v22  ;;  %1543 = vmatprep.mubr.msk.f32.mxu1 %vm1858_vm0, %v1857_v0 }
  0x73   :  { %386 = vmatpush1.msra.mxu0 %v2018_v23  ;;  %1529 = vmatprep.subr.mxu1 %v1857_v0 }
  0x74   :  { %387 = vmatprep.subr.mxu0 %v2024_v25  ;;  %1530 = vmatpush3.msra.mxu1 %v2043_v29 }
  0x75   :  { %388 = vmatpush1.msra.mxu0 %v2028_v26  ;;  %1531 = vmatprep.subr.mxu1 %v1857_v0 }
  0x76   :  { %422 = vmatmul.mubr.f32.vlgmr.msra.gmra.mxu0 %v1857_v0  ;;  %531 = vmatprep.subr.mxu0 %v1909_v45 }
  0x77   :  { %532 = vmatpush1.msra.mxu0 %v1911_v46  ;;  %1532 = vmatpush3.msra.mxu1 %v2049_v30  ;;  %v191_v46 = vsub.s32 2, %v2134_v38 }
  0x78   :  { %533 = vmatprep.subr.mxu0 %v1913_v48  ;;  %1533 = vmatprep.subr.mxu1 %v1857_v0 }
  0x79   :  { %534 = vmatpush1.msra.mxu0 %v1916_v49  ;;  %1534 = vmatpush3.msra.mxu1 %v2055_v31 }
  0x7a   :  { %535 = vmatprep.subr.mxu0 %v1919_v51  ;;  %1535 = vmatprep.subr.mxu1 %v1857_v0  ;;  %v192_v51 = vrot.slane %v176_v41, %v191_v46  ;;  %v710_v41 = vld [vmem:[#allocation7 + $0x1e8] sm:$0xff] }
  0x7b   :  { %536 = vmatpush1.msra.mxu0 %v1922_v52  ;;  %1536 = vmatpush3.msra.mxu1 %v2061_v32 }
  0x7c   :  { %537 = vmatprep.subr.mxu0 %v1925_v54  ;;  %1537 = vmatprep.subr.mxu1 %v1857_v0 }
  0x7d   :  { %538 = vmatpush1.msra.mxu0 %v1928_v55  ;;  %1538 = vmatpush3.msra.mxu1 %v2067_v33 }
  0x7e   :  { %539 = vmatprep.subr.mxu0 %v1931_v56  ;;  %1539 = vmatprep.subr.mxu1 %v1857_v0 }
  0x7f   :  { %540 = vmatpush1.msra.mxu0 %v1934_v58  ;;  %1540 = vmatpush3.msra.mxu1 %v133_v34 }
  0x80   :  { %541 = vmatprep.subr.mxu0 %v1938_v60  ;;  %1541 = vmatprep.subr.mxu1 %v1857_v0 }
  0x81   :  { %542 = vmatpush1.msra.mxu0 %v1941_v61  ;;  %1542 = vmatpush3.msra.mxu1 %v130_v35 }
  0x82   :  { %543 = vmatprep.subr.mxu0 %v1944_v63  ;;  %1544 = vmatmul.mubr.f32.vlgmr.msra.gmra.mxu1 %v1857_v0 }
  0x83   :  { %544 = vmatpush1.msra.mxu0 %v1947_v1  ;;  %1546 = vmatprep.subr.mxu1 %v1857_v0 }
  0x84   :  { %1547 = vmatpush3.msra.mxu1 %v1962_v6  ;;  %545 = vmatprep.subr.mxu0 %v1950_v2 }
  0x85   :  { %1548 = vmatprep.subr.mxu1 %v1857_v0  ;;  %546 = vmatpush1.msra.mxu0 %v1953_v3 }
  0x86   :  { %1549 = vmatpush3.msra.mxu1 %v1971_v9  ;;  %547 = vmatprep.subr.mxu0 %v1956_v4 }
  0x87   :  { %1550 = vmatprep.subr.mxu1 %v1857_v0  ;;  %548 = vmatpush1.msra.mxu0 %v1959_v5  ;;  %v2154_v5 = vld [vmem:[%s2394_s4] ss:$0 sm:$0xff] }
  0x88   :  { %1551 = vmatpush3.msra.mxu1 %v1981_v12  ;;  %549 = vmatprep.subr.mxu0 %v1965_v7 }
  0x89   :  { %1552 = vmatprep.subr.mxu1 %v1857_v0  ;;  %550 = vmatpush1.msra.mxu0 %v1968_v8 }
  0x8a   :  { %1553 = vmatpush3.msra.mxu1 %v1991_v15  ;;  %551 = vmatprep.subr.mxu0 %v1974_v10 }
  0x8b   :  { %1554 = vmatprep.subr.mxu1 %v1857_v0  ;;  %552 = vmatpush1.msra.mxu0 %v1978_v11 }
  0x8c   :  { %1555 = vmatpush3.msra.mxu1 %v2001_v18  ;;  %553 = vmatprep.subr.mxu0 %v1984_v13  ;;  %v742_v18 = vld [vmem:[#allocation7 + $0x2e8] sm:$0xff] }
  0x8d   :  { %1556 = vmatprep.subr.mxu1 %v1857_v0  ;;  %554 = vmatpush1.msra.mxu0 %v1988_v14 }
  0x8e   :  { %1557 = vmatpush3.msra.mxu1 %v2011_v21  ;;  %555 = vmatprep.subr.mxu0 %v1994_v16  ;;  %v737_v21 = vld [vmem:[#allocation7 + $0x2c0] sm:$0xff] }
  0x8f   :  { %1558 = vmatprep.subr.mxu1 %v1857_v0  ;;  %556 = vmatpush1.msra.mxu0 %v1998_v17 }
  0x90   :  { %1559 = vmatpush3.msra.mxu1 %v2021_v24  ;;  %557 = vmatprep.subr.mxu0 %v2004_v19  ;;  %v740_v19 = vld [vmem:[#allocation7 + $0x2d8] sm:$0xff]  ;;  %v733_v24 = vld [vmem:[#allocation7 + $0x2a0] sm:$0xff] }
  0x91   :  { %1560 = vmatprep.subr.mxu1 %v1857_v0  ;;  %558 = vmatpush1.msra.mxu0 %v2008_v20  ;;  %v739_v20 = vld [vmem:[#allocation7 + $0x2d0] sm:$0xff] }
  0x92   :  { %1561 = vmatpush3.msra.mxu1 %v2031_v27  ;;  %559 = vmatprep.subr.mxu0 %v2014_v22  ;;  %v736_v22 = vld [vmem:[#allocation7 + $0x2b8] sm:$0xff] }
  0x93   :  { %1562 = vmatprep.subr.mxu1 %v1857_v0  ;;  %560 = vmatpush1.msra.mxu0 %v2018_v23  ;;  %v734_v23 = vld [vmem:[#allocation7 + $0x2a8] sm:$0xff]  ;;  %v728_v27 = vld [vmem:[#allocation7 + $0x278] sm:$0xff] }
  0x94   :  { %1563 = vmatpush3.msra.mxu1 %v2037_v28  ;;  %561 = vmatprep.subr.mxu0 %v2024_v25  ;;  %v731_v25 = vld [vmem:[#allocation7 + $0x290] sm:$0xff] }
  0x95   :  { %1564 = vmatprep.subr.mxu1 %v1857_v0  ;;  %562 = vmatpush1.msra.mxu0 %v2028_v26  ;;  %v730_v26 = vld [vmem:[#allocation7 + $0x288] sm:$0xff]  ;;  %v727_v28 = vld [vmem:[#allocation7 + $0x270] sm:$0xff] }
  0x96   :  { %1565 = vmatpush3.msra.mxu1 %v2043_v29  ;;  %595 = vmatprep.mubr.f32.mxu0 %v1857_v0  ;;  %v725_v29 = vld [vmem:[#allocation7 + $0x260] sm:$0xff] }
  0x97   :  { %1566 = vmatprep.subr.mxu1 %v1857_v0  ;;  %1578 = vmatprep.mubr.msk.f32.mxu1 %vm1858_vm0, %v1857_v0 }
  0x98   :  { %1567 = vmatpush3.msra.mxu1 %v2049_v30  ;;  %816 = vmatprep.subr.mxu0 %v743_v36  ;;  %v724_v30 = vld [vmem:[#allocation7 + $0x258] sm:$0xff]  ;;  %v715_v36 = vld [vmem:[#allocation7 + $0x210] sm:$0xff] }
  0x99   :  { %1568 = vmatprep.subr.mxu1 %v1857_v0 }
  0x9a   :  { %1569 = vmatpush3.msra.mxu1 %v2055_v31  ;;  %v722_v31 = vld [vmem:[#allocation7 + $0x248] sm:$0xff] }
  0x9b   :  { %1570 = vmatprep.subr.mxu1 %v1857_v0 }
  0x9c   :  { %1571 = vmatpush3.msra.mxu1 %v2061_v32  ;;  %v721_v32 = vld [vmem:[#allocation7 + $0x240] sm:$0xff] }
  0x9d   :  { %1572 = vmatprep.subr.mxu1 %v1857_v0 }
  0x9e   :  { %1573 = vmatpush3.msra.mxu1 %v2067_v33  ;;  %v719_v33 = vld [vmem:[#allocation7 + $0x230] sm:$0xff] }
  0x9f   :  { %1574 = vmatprep.subr.mxu1 %v1857_v0 }
  0xa0   :  { %1575 = vmatpush3.msra.mxu1 %v133_v34  ;;  %v718_v34 = vld [vmem:[#allocation7 + $0x228] sm:$0xff] }
  0xa1   :  { %1576 = vmatprep.subr.mxu1 %v1857_v0 }
  0xa2   :  { %1577 = vmatpush3.msra.mxu1 %v130_v35  ;;  %v716_v35 = vld [vmem:[#allocation7 + $0x218] sm:$0xff] }
 0x116   :  { %v262_v39 = vpop.f32.mrf.mxu0 }
 0x117   :  { %v263_v54 = vadd.f32 %v262_v39, %v184_v44  ;;  %v712_v39 = vld [vmem:[#allocation7 + $0x1f8] sm:$0xff] }
 0x118   :  { %v264_v43 = vpop.f32.mrf.mxu0 }
 0x119   :  { %v265_v59 = vadd.f32 %v264_v43, %v188_v47  ;;  %v709_v43 = vld [vmem:[#allocation7 + $0x1e0] sm:$0xff] }
 0x11a   :  { %v268_v45 = vpop.f32.mrf.mxu0 }
 0x11b   :  { %v2143_v48 = vadd.f32 %v268_v45, %v184_v44  ;;  %v707_v44 = vld [vmem:[#allocation7 + $0x1d0] sm:$0xff]  ;;  %v706_v45 = vld [vmem:[#allocation7 + $0x1c8] sm:$0xff] }
 0x11c   :  { %v270_v49 = vpop.f32.mrf.mxu0 }
 0x11d   :  { %v2145_v50 = vadd.f32 %v270_v49, %v188_v47  ;;  %v704_v47 = vld [vmem:[#allocation7 + $0x1b8] sm:$0xff]  ;;  %v703_v49 = vld [vmem:[#allocation7 + $0x1b0] sm:$0xff] }
 0x11f   :  { %v1510_v52 = vpop.f32.mrf.mxu1 }
 0x120   :  { %v2149_v53 = vadd.f32 %v1510_v52, %v192_v51  ;;  %v700_v52 = vld [vmem:[#allocation7 + $0x198] sm:$0xff] }
 0x121   :  { %v339_v62 = vpop.f32.mrf.mxu1 }
 0x122   :  { %v340_v9 = vadd.f32 %v339_v62, %v192_v51  ;;  %v701_v51 = vld [vmem:[#allocation7 + $0x1a0] sm:$0xff]  ;;  %v2171_v62 = vld [vmem:[#allocation9 + $0x2d8] sm:$0xff] }
 0x136   :  { %v423_v55 = vpop.f32.mrf.mxu0 }
 0x137   :  { %v498_v56 = vadd.f32 %v423_v55, %v263_v54  ;;  %v698_v54 = vld [vmem:[#allocation7 + $0x188] sm:$0xff]  ;;  %v697_v55 = vld [vmem:[#allocation7 + $0x180] sm:$0xff] }
 0x138   :  { %v425_v58 = vpop.f32.mrf.mxu0 }
 0x139   :  { %v1361_v57 = vmul.f32 -1.442695, %v498_v56  ;;  %v505_v60 = vadd.f32 %v425_v58, %v265_v59  ;;  %v744_v56 = vld [vmem:[#allocation7 + $0x2f8] sm:$0xff]  ;;  %v738_v58 = vld [vmem:[#allocation7 + $0x2c8] sm:$0xff]  ;;  %v2165_v59 = vld [vmem:[#allocation9 + $0x2f0] sm:$0xff] }
 0x13a   :  { %1581 = vmatprep.subr.mxu1 %v744_v56 }
 0x13b   :  { %1699 = vpow2.f32 %v1361_v57  ;;  %v1362_v61 = vmul.f32 -1.442695, %v505_v60  ;;  %v741_v57 = vld [vmem:[#allocation7 + $0x2e0] sm:$0xff]  ;;  %v2168_v60 = vld [vmem:[#allocation9 + $0x2e8] sm:$0xff] }
 0x13d   :  { %1701 = vpow2.f32 %v1362_v61  ;;  %v735_v61 = vld [vmem:[#allocation7 + $0x2b0] sm:$0xff] }
 0x142   :  { %v494_v63 = vpop.f32.mrf.mxu1 }
 0x143   :  { %v518_v7 = vadd.f32 %v2154_v5, %v494_v63  ;;  %v2174_v63 = vld [vmem:[#allocation9 + $0x2d0] sm:$0xff] }
 0x144   :  { %v1545_v2 = vpop.f32.mrf.mxu1 }
 0x145   :  { %v2177_v2 = vld [vmem:[#allocation9 + $0x2c0] sm:$0xff] }
 0x148   :  { %v1700_v1 = vpop.eup %1699 }
 0x149   :  { %v502_v3 = vadd.f32 1.0, %v1700_v1  ;;  %v732_v1 = vld [vmem:[#allocation7 + $0x298] sm:$0xff] }
 0x14a   :  { %v1702_v4 = vpop.eup %1701 }
 0x14b   :  { %1703 = vrcp.f32 %v502_v3  ;;  %v509_v6 = vadd.f32 1.0, %v1702_v4  ;;  %v2180_v3 = vld [vmem:[#allocation9 + $0x2b8] sm:$0xff]  ;;  %v729_v4 = vld [vmem:[#allocation7 + $0x280] sm:$0xff] }
 0x14d   :  { %1705 = vrcp.f32 %v509_v6  ;;  %v2183_v6 = vld [vmem:[#allocation9 + $0x2a8] sm:$0xff] }
 0x158   :  { %v1704_v8 = vpop.eup %1703 }
 0x159   :  { %v519_v10 = vmul.f32 %v1704_v8, %v518_v7  ;;  %v2186_v7 = vld [vmem:[#allocation9 + $0x2a0] sm:$0xff]  ;;  %v726_v8 = vld [vmem:[#allocation7 + $0x268] sm:$0xff] }
 0x15a   :  { %v1706_v12 = vpop.eup %1705 }
 0x15b   :  { %v520_v11 = vadd.f32 %v519_v10, %v340_v9  ;;  %v522_v13 = vsub.f32 1.0, %v1706_v12  ;;  %v524_v16 = vmul.f32 0.0, %v1706_v12  ;;  %v2189_v9 = vld [vmem:[#allocation9 + $0x290] sm:$0xff]  ;;  %v2192_v10 = vld [vmem:[#allocation9 + $0x288] sm:$0xff]  ;;  %v2195_v12 = vld [vmem:[#allocation9 + $0x278] sm:$0xff] }
 0x15d   :  { %1707 = vtanh.f32 %v520_v11  ;;  %v723_v11 = vld [vmem:[#allocation7 + $0x250] sm:$0xff] }
 0x16a   :  { %v1708_v14 = vpop.eup %1707 }
 0x16b   :  { %v523_v15 = vmul.f32 %v1708_v14, %v522_v13  ;;  %v2197_v13 = vld [vmem:[#allocation9 + $0x270] sm:$0xff]  ;;  %v720_v14 = vld [vmem:[#allocation7 + $0x238] sm:$0xff] }
 0x16d   :  { %v2157_v17 = vadd.f32 %v524_v16, %v523_v15  ;;  %v2200_v15 = vld [vmem:[#allocation9 + $0x260] sm:$0xff]  ;;  %v2202_v16 = vld [vmem:[#allocation9 + $0x258] sm:$0xff] }
 0x16f   :  { %596 = vmatmul.mubr.f32.vlgmr.msra.gmra.mxu0 %v2157_v17  ;;  %1579 = vmatmul.mubr.f32.vlgmr.msra.gmra.mxu1 %v2157_v17 }
 0x170   :  { %817 = vmatpush1.msra.mxu0 %v742_v18  ;;  %1613 = vmatprep.mubr.f32.mxu1 %v2157_v17  ;;  %v717_v18 = vld [vmem:[#allocation7 + $0x220] sm:$0xff] }
 0x171   :  { %818 = vmatprep.subr.mxu0 %v740_v19  ;;  %880 = vmatprep.mubr.f32.mxu0 %v1857_v0  ;;  %v2205_v19 = vld [vmem:[#allocation9 + $0x248] sm:$0xff] }
 0x172   :  { %819 = vmatpush1.msra.mxu0 %v739_v20  ;;  %1582 = vmatpush3.msra.mxu1 %v744_v56  ;;  %v2208_v20 = vld [vmem:[#allocation9 + $0x240] sm:$0xff] }
 0x173   :  { %820 = vmatprep.subr.mxu0 %v737_v21  ;;  %1583 = vmatprep.subr.mxu1 %v741_v57  ;;  %v714_v21 = vld [vmem:[#allocation7 + $0x208] sm:$0xff] }
 0x174   :  { %821 = vmatpush1.msra.mxu0 %v736_v22  ;;  %1584 = vmatpush3.msra.mxu1 %v741_v57  ;;  %v2211_v22 = vld [vmem:[#allocation9 + $0x230] sm:$0xff] }
 0x175   :  { %822 = vmatprep.subr.mxu0 %v734_v23  ;;  %1585 = vmatprep.subr.mxu1 %v738_v58  ;;  %v2214_v23 = vld [vmem:[#allocation9 + $0x228] sm:$0xff] }
 0x176   :  { %823 = vmatpush1.msra.mxu0 %v733_v24  ;;  %1586 = vmatpush3.msra.mxu1 %v738_v58  ;;  %v711_v24 = vld [vmem:[#allocation7 + $0x1f0] sm:$0xff] }
 0x177   :  { %824 = vmatprep.subr.mxu0 %v731_v25  ;;  %1587 = vmatprep.subr.mxu1 %v735_v61  ;;  %v2217_v25 = vld [vmem:[#allocation9 + $0x218] sm:$0xff] }
 0x178   :  { %825 = vmatpush1.msra.mxu0 %v730_v26  ;;  %1588 = vmatpush3.msra.mxu1 %v735_v61  ;;  %v2220_v26 = vld [vmem:[#allocation9 + $0x210] sm:$0xff] }
 0x179   :  { %826 = vmatprep.subr.mxu0 %v728_v27  ;;  %1589 = vmatprep.subr.mxu1 %v732_v1  ;;  %v708_v27 = vld [vmem:[#allocation7 + $0x1d8] sm:$0xff] }
 0x17a   :  { %827 = vmatpush1.msra.mxu0 %v727_v28  ;;  %1590 = vmatpush3.msra.mxu1 %v732_v1  ;;  %v2223_v28 = vld [vmem:[#allocation9 + $0x200] sm:$0xff] }
 0x17b   :  { %828 = vmatprep.subr.mxu0 %v725_v29  ;;  %1591 = vmatprep.subr.mxu1 %v729_v4  ;;  %v2226_v29 = vld [vmem:[#allocation9 + $0x1f8] sm:$0xff] }
 0x17c   :  { %829 = vmatpush1.msra.mxu0 %v724_v30  ;;  %1592 = vmatpush3.msra.mxu1 %v729_v4  ;;  %v705_v30 = vld [vmem:[#allocation7 + $0x1c0] sm:$0xff] }
 0x17d   :  { %830 = vmatprep.subr.mxu0 %v722_v31  ;;  %1593 = vmatprep.subr.mxu1 %v726_v8  ;;  %v2229_v31 = vld [vmem:[#allocation9 + $0x1e8] sm:$0xff] }
 0x17e   :  { %831 = vmatpush1.msra.mxu0 %v721_v32  ;;  %1594 = vmatpush3.msra.mxu1 %v726_v8  ;;  %v2232_v32 = vld [vmem:[#allocation9 + $0x1e0] sm:$0xff] }
 0x17f   :  { %832 = vmatprep.subr.mxu0 %v719_v33  ;;  %1595 = vmatprep.subr.mxu1 %v723_v11  ;;  %v702_v33 = vld [vmem:[#allocation7 + $0x1a8] sm:$0xff] }
 0x180   :  { %833 = vmatpush1.msra.mxu0 %v718_v34  ;;  %1596 = vmatpush3.msra.mxu1 %v723_v11  ;;  %v2235_v34 = vld [vmem:[#allocation9 + $0x1d0] sm:$0xff] }
 0x181   :  { %834 = vmatprep.subr.mxu0 %v716_v35  ;;  %1597 = vmatprep.subr.mxu1 %v720_v14  ;;  %v2238_v35 = vld [vmem:[#allocation9 + $0x1c8] sm:$0xff] }
 0x182   :  { %835 = vmatpush1.msra.mxu0 %v715_v36  ;;  %1598 = vmatpush3.msra.mxu1 %v720_v14  ;;  %v699_v36 = vld [vmem:[#allocation7 + $0x190] sm:$0xff] }
 0x183   :  { %836 = vmatprep.subr.mxu0 %v713_v37  ;;  %1599 = vmatprep.subr.mxu1 %v717_v18  ;;  %v2241_v37 = vld [vmem:[#allocation9 + $0x1b8] sm:$0xff] }
 0x184   :  { %837 = vmatpush1.msra.mxu0 %v712_v39  ;;  %1600 = vmatpush3.msra.mxu1 %v717_v18  ;;  %v2244_v39 = vld [vmem:[#allocation9 + $0x1b0] sm:$0xff] }
 0x185   :  { %838 = vmatprep.subr.mxu0 %v710_v41  ;;  %1601 = vmatprep.subr.mxu1 %v714_v21  ;;  %v2249_v41 = vld [vmem:[#allocation9 + $0x1a0] sm:$0xff] }
 0x186   :  { %839 = vmatpush1.msra.mxu0 %v709_v43  ;;  %1602 = vmatpush3.msra.mxu1 %v714_v21  ;;  %v2251_v43 = vld [vmem:[#allocation9 + $0x198] sm:$0xff] }
 0x187   :  { %840 = vmatprep.subr.mxu0 %v707_v44  ;;  %1603 = vmatprep.subr.mxu1 %v711_v24  ;;  %v2253_v44 = vld [vmem:[#allocation9 + $0x188] sm:$0xff] }
 0x188   :  { %841 = vmatpush1.msra.mxu0 %v706_v45  ;;  %1604 = vmatpush3.msra.mxu1 %v711_v24  ;;  %v2257_v45 = vld [vmem:[#allocation9 + $0x180] sm:$0xff] }
 0x189   :  { %842 = vmatprep.subr.mxu0 %v704_v47  ;;  %1605 = vmatprep.subr.mxu1 %v708_v27 }
 0x18a   :  { %843 = vmatpush1.msra.mxu0 %v703_v49  ;;  %1606 = vmatpush3.msra.mxu1 %v708_v27 }
 0x18b   :  { %844 = vmatprep.subr.mxu0 %v701_v51  ;;  %1607 = vmatprep.subr.mxu1 %v705_v30 }
 0x18c   :  { %845 = vmatpush1.msra.mxu0 %v700_v52  ;;  %1608 = vmatpush3.msra.mxu1 %v705_v30  ;;  %v2268_v30 = vld [vmem:[#allocation9 + $0x2f8] sm:$0xff] }
 0x18d   :  { %846 = vmatprep.subr.mxu0 %v698_v54  ;;  %1609 = vmatprep.subr.mxu1 %v702_v33 }
 0x18e   :  { %847 = vmatpush1.msra.mxu0 %v697_v55  ;;  %1610 = vmatpush3.msra.mxu1 %v702_v33  ;;  %v2270_v33 = vld [vmem:[#allocation9 + $0x2e0] sm:$0xff] }
 0x18f   :  { %881 = vmatmul.mubr.f32.vlgmr.msra.gmra.mxu0 %v2157_v17  ;;  %977 = vmatprep.subr.mxu0 %v2165_v59 }
 0x190   :  { %886 = vmatprep.mubr.f32.mxu0 %v1857_v0  ;;  %978 = vmatpush1.msra.mxu0 %v2168_v60 }
 0x191   :  { %979 = vmatprep.subr.mxu0 %v2171_v62  ;;  %1611 = vmatprep.subr.mxu1 %v699_v36 }
 0x192   :  { %980 = vmatpush1.msra.mxu0 %v2174_v63  ;;  %1612 = vmatpush3.msra.mxu1 %v699_v36  ;;  %v2293_v36 = vld [vmem:[#allocation9 + $0x280] sm:$0xff] }
 0x193   :  { %981 = vmatprep.subr.mxu0 %v2177_v2  ;;  %1616 = vmatprep.subr.mxu1 %v1857_v0 }
 0x194   :  { %982 = vmatpush1.msra.mxu0 %v2180_v3 }
 0x195   :  { %983 = vmatprep.subr.mxu0 %v2183_v6 }
 0x196   :  { %984 = vmatpush1.msra.mxu0 %v2186_v7 }
 0x197   :  { %985 = vmatprep.subr.mxu0 %v2189_v9 }
 0x198   :  { %986 = vmatpush1.msra.mxu0 %v2192_v10 }
 0x199   :  { %987 = vmatprep.subr.mxu0 %v2195_v12 }
 0x19a   :  { %988 = vmatpush1.msra.mxu0 %v2197_v13 }
 0x19b   :  { %989 = vmatprep.subr.mxu0 %v2200_v15 }
 0x19c   :  { %990 = vmatpush1.msra.mxu0 %v2202_v16 }
 0x19d   :  { %991 = vmatprep.subr.mxu0 %v2205_v19 }
 0x19e   :  { %992 = vmatpush1.msra.mxu0 %v2208_v20 }
 0x19f   :  { %993 = vmatprep.subr.mxu0 %v2211_v22 }
 0x1a0   :  { %994 = vmatpush1.msra.mxu0 %v2214_v23 }
 0x1a1   :  { %995 = vmatprep.subr.mxu0 %v2217_v25 }
 0x1a2   :  { %996 = vmatpush1.msra.mxu0 %v2220_v26 }
 0x1a3   :  { %997 = vmatprep.subr.mxu0 %v2223_v28 }
 0x1a4   :  { %998 = vmatpush1.msra.mxu0 %v2226_v29 }
 0x1a5   :  { %999 = vmatprep.subr.mxu0 %v2229_v31 }
 0x1a6   :  { %1000 = vmatpush1.msra.mxu0 %v2232_v32 }
 0x1a7   :  { %1001 = vmatprep.subr.mxu0 %v2235_v34 }
 0x1a8   :  { %1002 = vmatpush1.msra.mxu0 %v2238_v35 }
 0x1a9   :  { %1003 = vmatprep.subr.mxu0 %v2241_v37 }
 0x1aa   :  { %1004 = vmatpush1.msra.mxu0 %v2244_v39 }
 0x1ab   :  { %1005 = vmatprep.subr.mxu0 %v2249_v41 }
 0x1ac   :  { %1006 = vmatpush1.msra.mxu0 %v2251_v43 }
 0x1ad   :  { %1007 = vmatprep.subr.mxu0 %v2253_v44 }
 0x1ae   :  { %1008 = vmatpush1.msra.mxu0 %v2257_v45 }
 0x1af   :  { %1150 = vmatprep.subr.mxu0 %v2165_v59 }
 0x22f   :  { %v597_v47 = vpop.f32.mrf.mxu0  ;;  %v668_v49 = vpop.f32.mrf.mxu1 }
 0x230   :  { %v672_v51 = vadd.f32 %v597_v47, %v2143_v48  ;;  %v686_v8 = vadd.f32 %v2154_v5, %v668_v49  ;;  %v2282_v5 = vld [vmem:[#allocation9 + $0x2b0] sm:$0xff] }
 0x231   :  { %v1580_v52 = vpop.f32.mrf.mxu1  ;;  %v599_v55 = vpop.f32.mrf.mxu0 }
 0x232   :  { %v1364_v54 = vmul.f32 -1.442695, %v672_v51  ;;  %v679_v56 = vadd.f32 %v599_v55, %v2145_v50 }
 0x234   :  { %1709 = vpow2.f32 %v1364_v54  ;;  %v1365_v57 = vmul.f32 -1.442695, %v679_v56 }
 0x236   :  { %1711 = vpow2.f32 %v1365_v57 }
 0x241   :  { %v1710_v58 = vpop.eup %1709 }
 0x242   :  { %v676_v61 = vadd.f32 1.0, %v1710_v58 }
 0x243   :  { %v1712_v1 = vpop.eup %1711 }
 0x244   :  { %1713 = vrcp.f32 %v676_v61  ;;  %v683_v4 = vadd.f32 1.0, %v1712_v1 }
 0x246   :  { %1715 = vrcp.f32 %v683_v4 }
 0x251   :  { %v1714_v59 = vpop.eup %1713 }
 0x252   :  { %v687_v11 = vmul.f32 %v1714_v59, %v686_v8 }
 0x253   :  { %v1716_v14 = vpop.eup %1715 }
 0x254   :  { %v688_v48 = vadd.f32 %v687_v11, %v2149_v53  ;;  %v690_v18 = vsub.f32 1.0, %v1716_v14  ;;  %v692_v50 = vmul.f32 %v1716_v14, %v2157_v17  ;;  %v2275_v53 = vld [vmem:[#allocation9 + $0x2c8] sm:$0xff]  ;;  %v2287_v17 = vld [vmem:[#allocation9 + $0x298] sm:$0xff] }
 0x256   :  { %1717 = vtanh.f32 %v688_v48 }
 0x263   :  { %v1718_v21 = vpop.eup %1717 }
 0x264   :  { %v691_v24 = vmul.f32 %v1718_v21, %v690_v18 }
 0x266   :  { %v693_v27 = vadd.f32 %v692_v50, %v691_v24 }
 0x268   :  { %887 = vmatmul.mubr.f32.gmra.mxu0 %v693_v27  ;;  %1614 = vmatmul.mubr.f32.vlgmr.msra.gmra.mxu1 %v693_v27 }
 0x269   :  { %1041 = vmatprep.mubr.f32.mxu0 %v1857_v0  ;;  %1617 = vmatpush3.msra.mxu1 %v2268_v30 }
 0x26a   :  { %1618 = vmatprep.subr.mxu1 %v1857_v0  ;;  %1648 = vmatprep.mubr.msk.f32.mxu1 %vm1858_vm0, %v1857_v0 }
 0x26b   :  { %1619 = vmatpush3.msra.mxu1 %v2270_v33 }
 0x26c   :  { %1042 = vmatmul.mubr.f32.vlgmr.msra.gmra.mxu0 %v1857_v0  ;;  %1620 = vmatprep.subr.mxu1 %v1857_v0 }
 0x26d   :  { %1621 = vmatpush3.msra.mxu1 %v2275_v53  ;;  %1151 = vmatpush1.msra.mxu0 %v2168_v60  ;;  %v2299_v60 = vld [vmem:[#allocation9 + $0x268] sm:$0xff] }
 0x26e   :  { %1622 = vmatprep.subr.mxu1 %v1857_v0  ;;  %1152 = vmatprep.subr.mxu0 %v2171_v62  ;;  %v2305_v62 = vld [vmem:[#allocation9 + $0x250] sm:$0xff] }
 0x26f   :  { %1623 = vmatpush3.msra.mxu1 %v2282_v5  ;;  %1153 = vmatpush1.msra.mxu0 %v2174_v63  ;;  %v2311_v63 = vld [vmem:[#allocation9 + $0x238] sm:$0xff] }
 0x270   :  { %1624 = vmatprep.subr.mxu1 %v1857_v0  ;;  %1154 = vmatprep.subr.mxu0 %v2177_v2  ;;  %v2317_v2 = vld [vmem:[#allocation9 + $0x220] sm:$0xff] }
 0x271   :  { %1625 = vmatpush3.msra.mxu1 %v2287_v17  ;;  %1155 = vmatpush1.msra.mxu0 %v2180_v3  ;;  %v763_v3 = vld [vmem:[#allocation9 + $0x208] sm:$0xff] }
 0x272   :  { %1626 = vmatprep.subr.mxu1 %v1857_v0  ;;  %1156 = vmatprep.subr.mxu0 %v2183_v6  ;;  %v760_v6 = vld [vmem:[#allocation9 + $0x1f0] sm:$0xff] }
 0x273   :  { %1627 = vmatpush3.msra.mxu1 %v2293_v36  ;;  %1157 = vmatpush1.msra.mxu0 %v2186_v7  ;;  %v757_v7 = vld [vmem:[#allocation9 + $0x1d8] sm:$0xff] }
 0x274   :  { %1628 = vmatprep.subr.mxu1 %v1857_v0  ;;  %1158 = vmatprep.subr.mxu0 %v2189_v9  ;;  %v754_v9 = vld [vmem:[#allocation9 + $0x1c0] sm:$0xff] }
 0x275   :  { %1629 = vmatpush3.msra.mxu1 %v2299_v60  ;;  %1159 = vmatpush1.msra.mxu0 %v2192_v10  ;;  %v751_v10 = vld [vmem:[#allocation9 + $0x1a8] sm:$0xff] }
 0x276   :  { %1630 = vmatprep.subr.mxu1 %v1857_v0  ;;  %1160 = vmatprep.subr.mxu0 %v2195_v12  ;;  %v748_v12 = vld [vmem:[#allocation9 + $0x190] sm:$0xff] }
 0x277   :  { %1631 = vmatpush3.msra.mxu1 %v2305_v62  ;;  %1161 = vmatpush1.msra.mxu0 %v2197_v13  ;;  %v882_v13 = vpop.f32.mrf.mxu0 }
 0x278   :  { %1632 = vmatprep.subr.mxu1 %v1857_v0  ;;  %1162 = vmatprep.subr.mxu0 %v2200_v15  ;;  %v795_v15 = vld [vmem:[#allocation10 + $0x3] sm:$0x7] }
 0x279   :  { %1633 = vmatpush3.msra.mxu1 %v2311_v63  ;;  %1163 = vmatpush1.msra.mxu0 %v2202_v16  ;;  %v812_v16 = vrot.slane %v795_v15, %v191_v46 }
 0x27a   :  { %1634 = vmatprep.subr.mxu1 %v1857_v0  ;;  %1164 = vmatprep.subr.mxu0 %v2205_v19  ;;  %v884_v19 = vpop.f32.mrf.mxu0 }
 0x27b   :  { %1635 = vmatpush3.msra.mxu1 %v2317_v2  ;;  %1165 = vmatpush1.msra.mxu0 %v2208_v20  ;;  %v804_v20 = vrot.slane %v795_v15, %v183_v40 }
 0x27c   :  { %1636 = vmatprep.subr.mxu1 %v1857_v0  ;;  %1166 = vmatprep.subr.mxu0 %v2211_v22 }
 0x27d   :  { %1637 = vmatpush3.msra.mxu1 %v763_v3  ;;  %1167 = vmatpush1.msra.mxu0 %v2214_v23 }
 0x27e   :  { %1638 = vmatprep.subr.mxu1 %v1857_v0  ;;  %1168 = vmatprep.subr.mxu0 %v2217_v25 }
 0x27f   :  { %1639 = vmatpush3.msra.mxu1 %v760_v6  ;;  %1169 = vmatpush1.msra.mxu0 %v2220_v26 }
 0x280   :  { %1640 = vmatprep.subr.mxu1 %v1857_v0  ;;  %1170 = vmatprep.subr.mxu0 %v2223_v28  ;;  %v883_v28 = vadd.f32 %v882_v13, %v804_v20 }
 0x281   :  { %1641 = vmatpush3.msra.mxu1 %v757_v7  ;;  %1171 = vmatpush1.msra.mxu0 %v2226_v29 }
 0x282   :  { %1642 = vmatprep.subr.mxu1 %v1857_v0  ;;  %1172 = vmatprep.subr.mxu0 %v2229_v31  ;;  %v808_v31 = vrot.slane %v795_v15, %v187_v42 }
 0x283   :  { %1643 = vmatpush3.msra.mxu1 %v754_v9  ;;  %1173 = vmatpush1.msra.mxu0 %v2232_v32 }
 0x284   :  { %1644 = vmatprep.subr.mxu1 %v1857_v0  ;;  %1174 = vmatprep.subr.mxu0 %v2235_v34 }
 0x285   :  { %1645 = vmatpush3.msra.mxu1 %v751_v10  ;;  %1175 = vmatpush1.msra.mxu0 %v2238_v35  ;;  %v885_v35 = vadd.f32 %v884_v19, %v808_v31 }
 0x286   :  { %1646 = vmatprep.subr.mxu1 %v1857_v0  ;;  %1176 = vmatprep.subr.mxu0 %v2241_v37 }
 0x287   :  { %1647 = vmatpush3.msra.mxu1 %v748_v12  ;;  %1177 = vmatpush1.msra.mxu0 %v2244_v39 }
 0x288   :  { %1649 = vmatmul.mubr.f32.vlgmr.msra.gmra.mxu1 %v1857_v0  ;;  %1651 = vmatprep.subr.mxu1 %v1857_v0 }
 0x289   :  { %1652 = vmatpush3.msra.mxu1 %v2268_v30  ;;  %1178 = vmatprep.subr.mxu0 %v2249_v41 }
 0x28a   :  { %1653 = vmatprep.subr.mxu1 %v1857_v0  ;;  %1179 = vmatpush1.msra.mxu0 %v2251_v43 }
 0x28b   :  { %1654 = vmatpush3.msra.mxu1 %v2270_v33  ;;  %1180 = vmatprep.subr.mxu0 %v2253_v44  ;;  %v1369_v44 = vld [vmem:[%s2394_s4 + $0x1] ss:$0 sm:$0xff]  ;;  %s1859_s4 = smov [#allocation12]  }
 0x28c   :  { %1655 = vmatprep.subr.mxu1 %v1857_v0  ;;  %1181 = vmatpush1.msra.mxu0 %v2257_v45  ;;  %s1350_s19 = sshll.u32 %s1859_s4, 4  ;;  %s1351_s19 = int_to_ptr.vmem [resolvable:$true] %s1350_s19 }
 0x28d   :  { %1656 = vmatpush3.msra.mxu1 %v2275_v53  ;;  %1214 = vmatprep.mubr.f32.mxu0 %v1857_v0  ;;  %s1819_s20 = scalar_lea.vmem %s1351_s19, 32  ;;  %p1824_p7 = scmp.lt.s32.totalorder %s1351_s19, %s1351_s19 }
 0x28e   :  { %1657 = vmatprep.subr.mxu1 %v1857_v0  ;;  %1683 = vmatprep.mubr.msk.f32.mxu1 %vm1858_vm0, %v1857_v0  ;;  %p1820_p6 = scmp.ne.s32.totalorder %s1351_s19, %s1819_s20  ;;  %p1825_p8 = scmp.lt.s32.totalorder %s1819_s20, %s1819_s20 }
 0x28f   :  { %1658 = vmatpush3.msra.mxu1 %v2282_v5 }
 0x290   :  { %1659 = vmatprep.subr.mxu1 %v1857_v0  ;;  %p1826_p9 = por %p1825_p8, %p1824_p7 }
 0x291   :  { %1660 = vmatpush3.msra.mxu1 %v2287_v17 }
 0x292   :  { %1661 = vmatprep.subr.mxu1 %v1857_v0  ;;  %p1827_p10 = pnand %p1826_p9, %p1820_p6 }
 0x293   :  { %1662 = vmatpush3.msra.mxu1 %v2293_v36 }
 0x294   :  { %1663 = vmatprep.subr.mxu1 %v1857_v0 }
 0x295   :  { %1664 = vmatpush3.msra.mxu1 %v2299_v60 }
 0x296   :  { %1665 = vmatprep.subr.mxu1 %v1857_v0 }
 0x297   :  { %1666 = vmatpush3.msra.mxu1 %v2305_v62 }
 0x298   :  { %1667 = vmatprep.subr.mxu1 %v1857_v0 }
 0x299   :  { %1668 = vmatpush3.msra.mxu1 %v2311_v63 }
 0x29a   :  { %1669 = vmatprep.subr.mxu1 %v1857_v0 }
 0x29b   :  { %1670 = vmatpush3.msra.mxu1 %v2317_v2 }
 0x29c   :  { %1671 = vmatprep.subr.mxu1 %v1857_v0 }
 0x29d   :  { %1672 = vmatpush3.msra.mxu1 %v763_v3 }
 0x29e   :  { %1673 = vmatprep.subr.mxu1 %v1857_v0 }
 0x29f   :  { %1674 = vmatpush3.msra.mxu1 %v760_v6 }
 0x2a0   :  { %1675 = vmatprep.subr.mxu1 %v1857_v0 }
 0x2a1   :  { %1676 = vmatpush3.msra.mxu1 %v757_v7 }
 0x2a2   :  { %1677 = vmatprep.subr.mxu1 %v1857_v0 }
 0x2a3   :  { %1678 = vmatpush3.msra.mxu1 %v754_v9 }
 0x2a4   :  { %1679 = vmatprep.subr.mxu1 %v1857_v0 }
 0x2a5   :  { %1680 = vmatpush3.msra.mxu1 %v751_v10 }
 0x2a6   :  { %1681 = vmatprep.subr.mxu1 %v1857_v0 }
 0x2a7   :  { %1682 = vmatpush3.msra.mxu1 %v748_v12 }
 0x328   :  { %v888_v22 = vpop.f32.mrf.mxu0  ;;  %v1615_v23 = vpop.f32.mrf.mxu1 }
 0x329   :  { %v965_v25 = vadd.f32 %v1615_v23, %v812_v16  ;;  %v889_v4 = vadd.f32 %v888_v22, %v804_v20 }
 0x32a   :  { %v890_v26 = vpop.f32.mrf.mxu0  ;;  %v959_v40 = vpop.f32.mrf.mxu1 }
 0x32b   :  { %v960_v51 = vadd.f32 %v959_v40, %v812_v16  ;;  %v891_v21 = vadd.f32 %v890_v26, %v808_v31 }
 0x32c   :  { %v1043_v29 = vpop.f32.mrf.mxu0 }
 0x32d   :  { %v1118_v0 = vadd.f32 %v1043_v29, %v883_v28 }
 0x32e   :  { %v1045_v34 = vpop.f32.mrf.mxu0 }
 0x32f   :  { %v1367_v32 = vmul.f32 -1.442695, %v1118_v0  ;;  %v1125_v37 = vadd.f32 %v1045_v34, %v885_v35 }
 0x331   :  { %1719 = vpow2.f32 %v1367_v32  ;;  %v1368_v46 = vmul.f32 -1.442695, %v1125_v37 }
 0x333   :  { %1721 = vpow2.f32 %v1368_v46 }
 0x33e   :  { %v1720_v39 = vpop.eup %1719 }
 0x33f   :  { %v1122_v41 = vadd.f32 1.0, %v1720_v39 }
 0x340   :  { %v1722_v43 = vpop.eup %1721 }
 0x341   :  { %1723 = vrcp.f32 %v1122_v41  ;;  %v1129_v42 = vadd.f32 1.0, %v1722_v43 }
 0x343   :  { %1725 = vrcp.f32 %v1129_v42 }
 0x348   :  { %v1114_v45 = vpop.f32.mrf.mxu1 }
 0x349   :  { %v1138_v47 = vadd.f32 %v1369_v44, %v1114_v45 }
 0x34a   :  { %v1650_v38 = vpop.f32.mrf.mxu1 }
 0x34e   :  { %v1724_v49 = vpop.eup %1723 }
 0x34f   :  { %v1139_v52 = vmul.f32 %v1724_v49, %v1138_v47 }
 0x350   :  { %v1726_v55 = vpop.eup %1725 }
 0x351   :  { %v1140_v54 = vadd.f32 %v1139_v52, %v960_v51  ;;  %v1142_v56 = vsub.f32 1.0, %v1726_v55  ;;  %v1144_v61 = vmul.f32 0.0, %v1726_v55 }
 0x353   :  { %1727 = vtanh.f32 %v1140_v54 }
 0x360   :  { %v1728_v57 = vpop.eup %1727 }
 0x361   :  { %v1143_v58 = vmul.f32 %v1728_v57, %v1142_v56 }
 0x363   :  { %v1145_v1 = vadd.f32 %v1144_v61, %v1143_v58 }
 0x365   :  { %1215 = vmatmul.mubr.f32.vlgmr.msra.gmra.mxu0 %v1145_v1  ;;  %1684 = vmatmul.mubr.f32.vlgmr.msra.gmra.mxu1 %v1145_v1  ;;  %v1326_v62 = vrot.slane %v1145_v1, 4 }
 0x367   :  { %v1327_v3 = vadd.f32 %v1326_v62, %v1145_v1 }
 0x369   :  { %v1328_v12 = vrot.slane %v1327_v3, 2 }
 0x36b   :  { %v1329_v15 = vadd.f32 %v1328_v12, %v1327_v3 }
 0x36d   :  { %v1330_v20 = vrot.slane %v1329_v15, 1 }
 0x425   :  { %v1216_v8 = vpop.f32.mrf.mxu0  ;;  %v1287_v59 = vpop.f32.mrf.mxu1 }
 0x426   :  { %v1291_v11 = vadd.f32 %v1216_v8, %v889_v4  ;;  %v1305_v5 = vadd.f32 %v1369_v44, %v1287_v59 }
 0x427   :  { %v1685_v48 = vpop.f32.mrf.mxu1  ;;  %v1218_v18 = vpop.f32.mrf.mxu0 }
 0x428   :  { %v1370_v14 = vmul.f32 -1.442695, %v1291_v11  ;;  %v1298_v24 = vadd.f32 %v1218_v18, %v891_v21 }
 0x42a   :  { %1729 = vpow2.f32 %v1370_v14  ;;  %v1371_v50 = vmul.f32 -1.442695, %v1298_v24 }
 0x42c   :  { %1731 = vpow2.f32 %v1371_v50 }
 0x437   :  { %v1730_v27 = vpop.eup %1729 }
 0x438   :  { %v1295_v30 = vadd.f32 1.0, %v1730_v27 }
 0x439   :  { %v1732_v33 = vpop.eup %1731 }
 0x43a   :  { %1733 = vrcp.f32 %v1295_v30  ;;  %v1302_v53 = vadd.f32 1.0, %v1732_v33 }
 0x43c   :  { %1735 = vrcp.f32 %v1302_v53 }
 0x447   :  { %v1734_v17 = vpop.eup %1733 }
 0x448   :  { %v1306_v36 = vmul.f32 %v1734_v17, %v1305_v5 }
 0x449   :  { %v1736_v63 = vpop.eup %1735 }
 0x44a   :  { %v1307_v60 = vadd.f32 %v1306_v36, %v965_v25  ;;  %v1309_v2 = vsub.f32 1.0, %v1736_v63  ;;  %v1311_v9 = vmul.f32 %v1736_v63, %v1145_v1  ;;  %v1331_v25 = vadd.f32 %v1330_v20, %v1329_v15 }
 0x44c   :  { %1737 = vtanh.f32 %v1307_v60 }
 0x459   :  { %v1738_v6 = vpop.eup %1737 }
 0x45a   :  { %v1310_v7 = vmul.f32 %v1738_v6, %v1309_v2 }
 0x45c   :  { %v1312_v10 = vadd.f32 %v1311_v9, %v1310_v7 }
 0x45e   :  { %v1332_v13 = vrot.slane %v1312_v10, 4 }
 0x460   :  { %v1333_v16 = vadd.f32 %v1332_v13, %v1312_v10 }
 0x462   :  { %v1334_v19 = vrot.slane %v1333_v16, 2 }
 0x464   :  { %v1335_v22 = vadd.f32 %v1334_v19, %v1333_v16 }
 0x466   :  { %v1336_v23 = vrot.slane %v1335_v22, 1 }
 0x468   :  { %v1337_v26 = vadd.f32 %v1336_v23, %v1335_v22 }
 0x46a   :  { %v1341_v28 = vsel %vm1340_vm1, %v1337_v26, %v1331_v25 }
 0x46b   :  { %1343 = vst [vmem:[#allocation12] sm:$0x3] %v1341_v28 }
 0x46c   :  { %1830 = shalt.err (!%p1827_p10)
}
 0x46d   :  { %1353 = dma.vmem_to_hbm [thread:$0]  %s1351_s19, 32, %s2395_s5, [#allocation6]  }
 0x46e   :  { %1845 = dma.done.wait [#allocation6], 32  }
 0x46f   :  { %1846 = vsyncadd [#allocation6], 4294967264 }
 0x470   :  { %1357 = vsyncpa [#allocation5], 1 }
 0x471   :  { %1358 = vsyncpa [#allocation8], 1 }
 0x472   :  { %1359 = vsyncpa [#allocation11], 1 }
 0x473   :  { %1360 = vsyncpa [#allocation6], 1 }

</bundles_post_ra>
